<compile_context>
chip_gen: v5e
topology: v5e:2x2
jax: 0.10.0
libtpu: 0.0.40
codegen_flags: <defaults>
</compile_context>

<pallas_src>
import functools

import jax
import jax.numpy as jnp
from jax.experimental import pallas as pl
from jax.experimental.pallas import tpu as pltpu

LANE = 128
NEG_INF = -1e30

VMEM_SPEC = pl.BlockSpec(memory_space=pltpu.MemorySpace.VMEM)
SMEM_SPEC = pl.BlockSpec(memory_space=pltpu.MemorySpace.SMEM)

# bias_pack row layout
_B_G1, _B_G2, _B_TE, _B_MU, _B_VAR, _B_TO, _B_GD = 0, 1, 2, 3, 4, 5, 6


def _rup(n, m=LANE):
    return ((n + m - 1) // m) * m


def _pad2d(a, rows, cols, fill=0.0):
    r, c = a.shape
    return jnp.pad(a, ((0, rows - r), (0, cols - c)), constant_values=fill)


# ----------------------------------------------------------------------------
# Fused GTVAE forward kernel
# ----------------------------------------------------------------------------
def _gtvae_fused_kernel(
    anneal_ref,                                                     # SMEM (1,)
    a_ref, x_ref, wg1_ref, wg2_ref, onehot_ref,                     # graph enc
    emb_ref, side_ref, pool_ref, bscale_ref, wte_ref,               # text enc
    wmv_ref, eps_ref,                                               # latent head
    wto_ref, wgd_ref, adj_ref, bias_ref,                            # decoders
    scal_ref,                                                       # (8, 128)
    *, batch_size, graph_elems, mm_real):
    f32 = jnp.float32
    bf16 = jnp.bfloat16

    # ---- packed small operands -------------------------------------------
    bias = bias_ref[...]                                            # (8, 128) f32
    bg1, bg2 = bias[_B_G1:_B_G1 + 1, :], bias[_B_G2:_B_G2 + 1, :]
    bte, bmu = bias[_B_TE:_B_TE + 1, :], bias[_B_MU:_B_MU + 1, :]
    bvar, bto = bias[_B_VAR:_B_VAR + 1, :], bias[_B_TO:_B_TO + 1, :]
    bgd = bias[_B_GD:_B_GD + 1, :]

    side = side_ref[...]                                            # (TB, 128) f32
    mask_in = side[:, 0:1]                                          # input != pad
    tgt_f = side[:, 1:2]                                            # target id (as f32)
    tmask = side[:, 2:3]                                            # target != pad

    bscale = bscale_ref[...]                                        # (B, 128) f32
    invcnt = bscale[:, 0:1]                                         # 1 / nodes-per-graph
    invlen = bscale[:, 1:2]                                         # 1 / tokens-per-seq

    # ---------------- GraphVAE.encode (synthetic GCN encoder) ---------------
    # TODO(synk): at production N replace dense A@x / one-hot mean-pool with an
    # in-kernel segment-sum (scalar-prefetch edge offsets) and tile A by rows.
    ax = jnp.dot(a_ref[...], x_ref[...], preferred_element_type=f32)        # [N, Ip]
    h1 = jnp.maximum(
        jnp.dot(ax.astype(bf16), wg1_ref[...], preferred_element_type=f32) + bg1,
        0.0)                                                                 # [N, Hp]
    h2 = jnp.dot(h1.astype(bf16), wg2_ref[...], preferred_element_type=f32) + bg2
    graph_h = jnp.dot(onehot_ref[...], h2.astype(bf16),
                      preferred_element_type=f32) * invcnt                   # [B, Dp]

    # ---------------- DAE.autoenc (synthetic mean-pool encoder) -------------
    emb = emb_ref[...]                                                       # bf16 [TB, Dp]
    masked_emb = emb * mask_in.astype(bf16)
    pooled = jnp.dot(pool_ref[...], masked_emb,
                     preferred_element_type=f32) * invlen                    # [B, Dp]
    text_h = jnp.dot(pooled.astype(bf16), wte_ref[...],
                     preferred_element_type=f32) + bte                       # [B, Dp]

    # ---------------- GTVAE joint latent head (fused mu|logvar) -------------
    joint_h = (text_h + graph_h) * 0.5
    Dp = eps_ref.shape[1]
    muvar = jnp.dot(joint_h.astype(bf16), wmv_ref[...],
                    preferred_element_type=f32)                              # [B, 2*Dp]
    mu = muvar[:, :Dp] + bmu
    logvar = muvar[:, Dp:] + bvar
    z = eps_ref[...] * jnp.exp(0.5 * logvar) + mu                            # [B, Dp]
    joint_kl = (-0.5 / batch_size) * jnp.sum(
        1.0 + logvar - mu * mu - jnp.exp(logvar))    # padded cols contribute 0

    # -------- DAE.decode + fused log_softmax / NLL / accuracy ----------------
    B = eps_ref.shape[0]
    TB = emb_ref.shape[0]
    t_steps = TB // B
    # row r = t*B + b of the decoder takes z[b]; pure sublane replication, no MXU.
    z_rows = jnp.concatenate([z] * t_steps, axis=0).astype(bf16)             # [TB, Dp]
    dec_h = emb + z_rows
    logits = jnp.dot(dec_h, wto_ref[...], preferred_element_type=f32) + bto  # [TB, Vp]
    row_max = jnp.max(logits, axis=-1, keepdims=True)
    denom = jnp.sum(jnp.exp(logits - row_max), axis=-1, keepdims=True)
    logp = logits - row_max - jnp.log(denom)
    Vp = logits.shape[1]
    vocab_f = jax.lax.broadcasted_iota(jnp.int32, logits.shape, 1).astype(f32)
    tgt_onehot = (vocab_f == tgt_f).astype(f32)
    tgt_logp = jnp.sum(logp * tgt_onehot, axis=-1, keepdims=True)            # [TB, 1]
    # per-sequence token-sum NLL, batch mean (matches previous kernel semantics)
    text_recon_loss = -jnp.sum(tgt_logp * tmask) / batch_size
    # strict first-argmax accuracy
    argmax_f = jnp.min(jnp.where(logits == row_max, vocab_f, float(Vp)),
                       axis=-1, keepdims=True)
    correct = (argmax_f == tgt_f).astype(f32)
    text_acc = jnp.sum(correct * tmask) / jnp.maximum(jnp.sum(tmask), 1.0)

    # -------- GraphVAE.decode + exact logits-based BCE / recall / precision --
    glogit = jnp.dot(z.astype(bf16), wgd_ref[...],
                     preferred_element_type=f32) + bgd                       # [B, Gp]
    col_ids = jax.lax.broadcasted_iota(jnp.int32, glogit.shape, 1)
    gmask = (col_ids < mm_real).astype(f32)                                  # built in-kernel
    adj = adj_ref[...]
    softplus = jnp.maximum(glogit, 0.0) + jnp.log(1.0 + jnp.exp(-jnp.abs(glogit)))
    graph_recon_loss = jnp.sum((softplus - adj * glogit) * gmask) / graph_elems
    pred_e = (glogit > 0.0).astype(f32) * gmask                              # p > 0.5 <=> logit > 0
    tp = jnp.sum(pred_e * adj)
    edge_recall = tp / jnp.maximum(jnp.sum(adj), 1.0)
    edge_precision = tp / jnp.maximum(jnp.sum(pred_e), 1.0)

    loss = joint_kl * anneal_ref[0] + text_recon_loss

    # Pack the 7 scalar results into one lane-dense (8,128) tile -> the only
    # HBM writeback is a single unmasked full-tile store (no (1,1) masked vst).
    row_ids = jax.lax.broadcasted_iota(jnp.int32, scal_ref.shape, 0)
    put = lambda r, v: (row_ids == r).astype(f32) * v
    scal_ref[...] = (put(0, loss) + put(1, text_acc) + put(2, joint_kl)
                     + put(3, graph_recon_loss) + put(4, text_recon_loss)
                     + put(5, edge_recall) + put(6, edge_precision))


# ----------------------------------------------------------------------------
# Parameters (deterministic synthetic init, pre-padded & pre-cast)
# ----------------------------------------------------------------------------
def init_params(key, input_dim, latent_dim, mlp_hid_dim, max_num_nodes, vocabsize):
    ks = jax.random.split(key, 10)
    s = 0.05
    bf16 = jnp.bfloat16

    def w(k, shape):
        return s * jax.random.normal(k, shape, jnp.float32)

    Ip, Hp, Dp = _rup(input_dim), _rup(mlp_hid_dim), _rup(latent_dim)
    Vp, Gp = _rup(vocabsize), _rup(max_num_nodes * max_num_nodes)
    # bias packing assumes every padded feature dim fits one 128-lane tile
    assert Hp == Dp == Vp == Gp == LANE, "bias_pack layout assumes 128-wide dims"

    Wmu = _pad2d(w(ks[6], (latent_dim, latent_dim)), Dp, Dp)
    Wvar = _pad2d(w(ks[7], (latent_dim, latent_dim)), Dp, Dp)

    # All biases packed into one (8,128) f32 tile; row 5 = text-decoder output
    # bias whose padded vocab lanes get -inf so they never win softmax/argmax.
    bias_pack = jnp.zeros((8, LANE), jnp.float32)
    bias_pack = bias_pack.at[_B_TO, vocabsize:].set(NEG_INF)

    return {
        # GraphVAE (synthetic GCN-style encoder + dense-adjacency decoder)
        "Wg1": _pad2d(w(ks[0], (input_dim, mlp_hid_dim)), Ip, Hp).astype(bf16),
        "Wg2": _pad2d(w(ks[1], (mlp_hid_dim, latent_dim)), Hp, Dp).astype(bf16),
        "Wgd": _pad2d(w(ks[2], (latent_dim, max_num_nodes * max_num_nodes)), Dp, Gp).astype(bf16),
        # DAE (synthetic embedding mean-pool encoder + tied-add decoder)
        "Emb": _pad2d(w(ks[3], (vocabsize, latent_dim)), vocabsize, Dp).astype(bf16),
        "Wte": _pad2d(w(ks[4], (latent_dim, latent_dim)), Dp, Dp).astype(bf16),
        "Wto": _pad2d(w(ks[5], (latent_dim, vocabsize)), Dp, Vp).astype(bf16),
        # GTVAE joint latent head: mu|logvar fused -> one 256-wide MXU matmul
        "Wmv": jnp.concatenate([Wmu, Wvar], axis=1).astype(bf16),   # [Dp, 2*Dp]
        "bias_pack": bias_pack,   # rows: bg1,bg2,bte,bmu,bvar,bto,bgd,spare
    }


# ----------------------------------------------------------------------------
# GTVAE forward: cheap XLA glue (scatter / gather / index math) + one fused
# Pallas kernel for the entire compute hot path.
# ----------------------------------------------------------------------------
def gtvae_forward(params, x, edge_index, batch, adj, gold_edges, dec_seq,
                  kl_anneal_w, eps, *, max_num_nodes, padidx, is_dev=False):
    f32 = jnp.float32
    bf16 = jnp.bfloat16
    B, T = dec_seq.shape
    N, input_dim = x.shape
    TB = T * B
    Ip = params["Wg1"].shape[0]
    Dp = params["Wmv"].shape[0]
    Gp = params["Wgd"].shape[1]
    MM = max_num_nodes * max_num_nodes

    # TODO(synk): dense-adjacency scatter and embedding row-gather stay as XLA
    # glue; at production N/V these should become in-kernel segment-sum / DMA
    # gather, and the pallas_call should grow a 'parallel' grid axis over the
    # TB/B rows so v7x's second TensorCore is used (not worth it at B=2, T=8).
    A = jnp.zeros((N, N), f32).at[edge_index[0], edge_index[1]].set(1.0)
    A = (jnp.maximum(A, A.T) + jnp.eye(N, dtype=f32)).astype(bf16)   # 0/1/2: exact bf16
    x_p = jnp.pad(x, ((0, 0), (0, Ip - input_dim))).astype(bf16)

    onehot = (batch[None, :] == jnp.arange(B, dtype=batch.dtype)[:, None]).astype(f32)
    inv_counts = 1.0 / jnp.maximum(onehot.sum(axis=1), 1.0)              # [B]
    onehot_bf = onehot.astype(bf16)                                      # 0/1: exact

    # text inputs / targets (exact PyTorch semantics)
    pad_tokens = jnp.full((B, 1), 0, dtype=dec_seq.dtype)
    inputs = dec_seq.T                                                   # [T, B]
    targets = jnp.concatenate((dec_seq[:, 1:], pad_tokens), axis=1).astype(jnp.int32).T

    inputs_flat = inputs.reshape(TB)                                     # row = t*B + b
    emb_flat = params["Emb"][inputs_flat]                                # single gather, bf16 [TB, Dp]
    mask_in = (inputs_flat != padidx).astype(f32)
    tgt_flat = targets.reshape(TB).astype(f32)
    tgt_mask = (targets.reshape(TB) != padidx).astype(f32)
    # sideband tile: lane0 = input mask, lane1 = target id, lane2 = target mask
    side = jnp.pad(jnp.stack([mask_in, tgt_flat, tgt_mask], axis=1),
                   ((0, 0), (0, LANE - 3)))
    inv_len = 1.0 / jnp.maximum(jnp.sum(mask_in.reshape(T, B), axis=0), 1.0)  # [B]
    # per-batch scales: lane0 = 1/nodes-per-graph, lane1 = 1/tokens-per-seq
    bscale = jnp.pad(jnp.stack([inv_counts, inv_len], axis=1),
                     ((0, 0), (0, LANE - 2)))

    # text pooling matrix (flat row r belongs to b = r % B); 0/1 -> exact bf16
    pool_mat = (jnp.arange(TB, dtype=jnp.int32) % B
                == jnp.arange(B, dtype=jnp.int32)[:, None]).astype(bf16)  # [B, TB]

    eps_p = jnp.pad(eps, ((0, 0), (0, Dp - eps.shape[1])))
    adj_p = jnp.pad(adj.reshape(B, MM).astype(f32), ((0, 0), (0, Gp - MM)))
    anneal = jnp.asarray(kl_anneal_w, f32).reshape(1)

    kernel = functools.partial(_gtvae_fused_kernel,
                               batch_size=float(B),
                               graph_elems=float(B * MM),
                               mm_real=MM)
    scal = pl.pallas_call(
        kernel,
        out_shape=jax.ShapeDtypeStruct((8, LANE), f32),
        in_specs=[SMEM_SPEC] + [VMEM_SPEC] * 16,
        out_specs=VMEM_SPEC,
    )(anneal,
      A, x_p, params["Wg1"], params["Wg2"], onehot_bf,
      emb_flat, side, pool_mat, bscale, params["Wte"],
      params["Wmv"], eps_p,
      params["Wto"], params["Wgd"], adj_p, params["bias_pack"])

    loss = scal[0, 0]
    text_acc = scal[1, 0]
    joint_kl_loss = scal[2, 0]
    graph_recon_loss = scal[3, 0]
    text_recon_loss = scal[4, 0]
    edge_recall = scal[5, 0]
    edge_precision = scal[6, 0]
    zero = jnp.float32(0.0)
    return (loss, text_acc, joint_kl_loss, graph_recon_loss, text_recon_loss,
            edge_recall, edge_precision, zero, zero, zero)


# ----------------------------------------------------------------------------
# Main
# ----------------------------------------------------------------------------
if __name__ == "__main__":
    INPUT_DIM, LATENT, MLP_HID = 4, 32, 32
    MAX_N, VOCAB, PADIDX = 8, 50, 0
    B, T = 2, 8
    N = B * MAX_N

    key = jax.random.PRNGKey(0)
    kparam, kx, kseq, keps = jax.random.split(key, 4)

    params = init_params(kparam, INPUT_DIM, LATENT, MLP_HID, MAX_N, VOCAB)

    x = jax.random.normal(kx, (N, INPUT_DIM), jnp.float32)
    batch = jnp.repeat(jnp.arange(B, dtype=jnp.int32), MAX_N)
    local = jnp.arange(N, dtype=jnp.int32) % MAX_N
    src = jnp.arange(N, dtype=jnp.int32)
    dst = (local + 1) % MAX_N + batch * MAX_N
    edge_index = jnp.stack([src, dst], axis=0)                            # [2, E]

    adj = jnp.zeros((B, MAX_N, MAX_N), jnp.float32)
    adj = adj.at[batch, local, (local + 1) % MAX_N].set(1.0)
    adj = jnp.maximum(adj, adj.transpose(0, 2, 1))
    gold_edges = edge_index

    dec_seq = jax.random.randint(kseq, (B, T), 1, VOCAB).astype(jnp.int32)
    eps = jax.random.normal(keps, (B, LATENT), jnp.float32)               # reparameterize noise
    kl_anneal_w = jnp.float32(0.5)

    outs = gtvae_forward(params, x, edge_index, batch, adj, gold_edges, dec_seq,
                         kl_anneal_w, eps, max_num_nodes=MAX_N, padidx=PADIDX)
    outs = jax.block_until_ready(outs)
    print("KERNEL_OK")
</pallas_src>

<mosaic_0001>
module attributes {stable_mosaic.version = 11 : i64} {
  func.func @_gtvae_fused_kernel(%arg0: memref<1xf32, #tpu.memory_space<smem>>, %arg1: memref<16x16xbf16, #tpu.memory_space<vmem>>, %arg2: memref<16x128xbf16, #tpu.memory_space<vmem>>, %arg3: memref<128x128xbf16, #tpu.memory_space<vmem>>, %arg4: memref<128x128xbf16, #tpu.memory_space<vmem>>, %arg5: memref<2x16xbf16, #tpu.memory_space<vmem>>, %arg6: memref<16x128xbf16, #tpu.memory_space<vmem>>, %arg7: memref<16x128xf32, #tpu.memory_space<vmem>>, %arg8: memref<2x16xbf16, #tpu.memory_space<vmem>>, %arg9: memref<2x128xf32, #tpu.memory_space<vmem>>, %arg10: memref<128x128xbf16, #tpu.memory_space<vmem>>, %arg11: memref<128x256xbf16, #tpu.memory_space<vmem>>, %arg12: memref<2x128xf32, #tpu.memory_space<vmem>>, %arg13: memref<128x128xbf16, #tpu.memory_space<vmem>>, %arg14: memref<128x128xbf16, #tpu.memory_space<vmem>>, %arg15: memref<2x128xf32, #tpu.memory_space<vmem>>, %arg16: memref<8x128xf32, #tpu.memory_space<vmem>>, %arg17: memref<8x128xf32, #tpu.memory_space<vmem>>) attributes {dimension_semantics = [], scalar_prefetch = 0 : i64, scratch_operands = 0 : i64, tpu.core_type = #tpu.core_type<tc>} {
    %c0 = arith.constant 0 : index
    %c0_0 = arith.constant 0 : index
    %0 = vector.load %arg16[%c0, %c0_0] : memref<8x128xf32, #tpu.memory_space<vmem>>, vector<8x128xf32>
    %1 = vector.extract_strided_slice %0 {offsets = [0, 0], sizes = [1, 128], strides = [1, 1]} : vector<8x128xf32> to vector<1x128xf32>
    %2 = vector.extract_strided_slice %0 {offsets = [1, 0], sizes = [1, 128], strides = [1, 1]} : vector<8x128xf32> to vector<1x128xf32>
    %3 = vector.extract_strided_slice %0 {offsets = [2, 0], sizes = [1, 128], strides = [1, 1]} : vector<8x128xf32> to vector<1x128xf32>
    %4 = vector.extract_strided_slice %0 {offsets = [3, 0], sizes = [1, 128], strides = [1, 1]} : vector<8x128xf32> to vector<1x128xf32>
    %5 = vector.extract_strided_slice %0 {offsets = [4, 0], sizes = [1, 128], strides = [1, 1]} : vector<8x128xf32> to vector<1x128xf32>
    %6 = vector.extract_strided_slice %0 {offsets = [5, 0], sizes = [1, 128], strides = [1, 1]} : vector<8x128xf32> to vector<1x128xf32>
    %7 = vector.extract_strided_slice %0 {offsets = [6, 0], sizes = [1, 128], strides = [1, 1]} : vector<8x128xf32> to vector<1x128xf32>
    %c0_1 = arith.constant 0 : index
    %c0_2 = arith.constant 0 : index
    %8 = vector.load %arg7[%c0_1, %c0_2] : memref<16x128xf32, #tpu.memory_space<vmem>>, vector<16x128xf32>
    %9 = vector.extract_strided_slice %8 {offsets = [0, 0], sizes = [16, 1], strides = [1, 1]} : vector<16x128xf32> to vector<16x1xf32>
    %10 = vector.extract_strided_slice %8 {offsets = [0, 1], sizes = [16, 1], strides = [1, 1]} : vector<16x128xf32> to vector<16x1xf32>
    %11 = vector.extract_strided_slice %8 {offsets = [0, 2], sizes = [16, 1], strides = [1, 1]} : vector<16x128xf32> to vector<16x1xf32>
    %c0_3 = arith.constant 0 : index
    %c0_4 = arith.constant 0 : index
    %12 = vector.load %arg9[%c0_3, %c0_4] : memref<2x128xf32, #tpu.memory_space<vmem>>, vector<2x128xf32>
    %13 = vector.extract_strided_slice %12 {offsets = [0, 0], sizes = [2, 1], strides = [1, 1]} : vector<2x128xf32> to vector<2x1xf32>
    %14 = vector.extract_strided_slice %12 {offsets = [0, 1], sizes = [2, 1], strides = [1, 1]} : vector<2x128xf32> to vector<2x1xf32>
    %c0_5 = arith.constant 0 : index
    %c0_6 = arith.constant 0 : index
    %15 = vector.load %arg1[%c0_5, %c0_6] : memref<16x16xbf16, #tpu.memory_space<vmem>>, vector<16x16xbf16>
    %c0_7 = arith.constant 0 : index
    %c0_8 = arith.constant 0 : index
    %16 = vector.load %arg2[%c0_7, %c0_8] : memref<16x128xbf16, #tpu.memory_space<vmem>>, vector<16x128xbf16>
    %cst = arith.constant dense<0.000000e+00> : vector<16x128xf32>
    %17 = tpu.matmul %15, %16, %cst {dimension_numbers = #tpu.dot_dimension_numbers<[1], [0], [0], [1], [0, 0, 1, 1], [], []>} : vector<16x16xbf16>, vector<16x128xbf16>, vector<16x128xf32> -> vector<16x128xf32>
    %18 = arith.truncf %17 : vector<16x128xf32> to vector<16x128xbf16>
    %c0_9 = arith.constant 0 : index
    %c0_10 = arith.constant 0 : index
    %19 = vector.load %arg3[%c0_9, %c0_10] : memref<128x128xbf16, #tpu.memory_space<vmem>>, vector<128x128xbf16>
    %cst_11 = arith.constant dense<0.000000e+00> : vector<16x128xf32>
    %20 = tpu.matmul %18, %19, %cst_11 {dimension_numbers = #tpu.dot_dimension_numbers<[1], [0], [0], [1], [0, 0, 1, 1], [], []>} : vector<16x128xbf16>, vector<128x128xbf16>, vector<16x128xf32> -> vector<16x128xf32>
    %21 = vector.broadcast %1 : vector<1x128xf32> to vector<16x128xf32>
    %22 = arith.addf %20, %21 : vector<16x128xf32>
    %cst_12 = arith.constant 0.000000e+00 : f32
    %23 = vector.broadcast %cst_12 : f32 to vector<16x128xf32>
    %24 = arith.maximumf %22, %23 : vector<16x128xf32>
    %25 = arith.truncf %24 : vector<16x128xf32> to vector<16x128xbf16>
    %c0_13 = arith.constant 0 : index
    %c0_14 = arith.constant 0 : index
    %26 = vector.load %arg4[%c0_13, %c0_14] : memref<128x128xbf16, #tpu.memory_space<vmem>>, vector<128x128xbf16>
    %cst_15 = arith.constant dense<0.000000e+00> : vector<16x128xf32>
    %27 = tpu.matmul %25, %26, %cst_15 {dimension_numbers = #tpu.dot_dimension_numbers<[1], [0], [0], [1], [0, 0, 1, 1], [], []>} : vector<16x128xbf16>, vector<128x128xbf16>, vector<16x128xf32> -> vector<16x128xf32>
    %28 = vector.broadcast %2 : vector<1x128xf32> to vector<16x128xf32>
    %29 = arith.addf %27, %28 : vector<16x128xf32>
    %c0_16 = arith.constant 0 : index
    %c0_17 = arith.constant 0 : index
    %30 = vector.load %arg5[%c0_16, %c0_17] : memref<2x16xbf16, #tpu.memory_space<vmem>>, vector<2x16xbf16>
    %31 = arith.truncf %29 : vector<16x128xf32> to vector<16x128xbf16>
    %cst_18 = arith.constant dense<0.000000e+00> : vector<2x128xf32>
    %32 = tpu.matmul %30, %31, %cst_18 {dimension_numbers = #tpu.dot_dimension_numbers<[1], [0], [0], [1], [0, 0, 1, 1], [], []>} : vector<2x16xbf16>, vector<16x128xbf16>, vector<2x128xf32> -> vector<2x128xf32>
    %33 = vector.broadcast %13 : vector<2x1xf32> to vector<2x128xf32>
    %34 = arith.mulf %32, %33 : vector<2x128xf32>
    %c0_19 = arith.constant 0 : index
    %c0_20 = arith.constant 0 : index
    %35 = vector.load %arg6[%c0_19, %c0_20] : memref<16x128xbf16, #tpu.memory_space<vmem>>, vector<16x128xbf16>
    %36 = arith.truncf %9 : vector<16x1xf32> to vector<16x1xbf16>
    %37 = vector.broadcast %36 : vector<16x1xbf16> to vector<16x128xbf16>
    %38 = arith.mulf %35, %37 : vector<16x128xbf16>
    %c0_21 = arith.constant 0 : index
    %c0_22 = arith.constant 0 : index
    %39 = vector.load %arg8[%c0_21, %c0_22] : memref<2x16xbf16, #tpu.memory_space<vmem>>, vector<2x16xbf16>
    %cst_23 = arith.constant dense<0.000000e+00> : vector<2x128xf32>
    %40 = tpu.matmul %39, %38, %cst_23 {dimension_numbers = #tpu.dot_dimension_numbers<[1], [0], [0], [1], [0, 0, 1, 1], [], []>} : vector<2x16xbf16>, vector<16x128xbf16>, vector<2x128xf32> -> vector<2x128xf32>
    %41 = vector.broadcast %14 : vector<2x1xf32> to vector<2x128xf32>
    %42 = arith.mulf %40, %41 : vector<2x128xf32>
    %43 = arith.truncf %42 : vector<2x128xf32> to vector<2x128xbf16>
    %c0_24 = arith.constant 0 : index
    %c0_25 = arith.constant 0 : index
    %44 = vector.load %arg10[%c0_24, %c0_25] : memref<128x128xbf16, #tpu.memory_space<vmem>>, vector<128x128xbf16>
    %cst_26 = arith.constant dense<0.000000e+00> : vector<2x128xf32>
    %45 = tpu.matmul %43, %44, %cst_26 {dimension_numbers = #tpu.dot_dimension_numbers<[1], [0], [0], [1], [0, 0, 1, 1], [], []>} : vector<2x128xbf16>, vector<128x128xbf16>, vector<2x128xf32> -> vector<2x128xf32>
    %46 = vector.broadcast %3 : vector<1x128xf32> to vector<2x128xf32>
    %47 = arith.addf %45, %46 : vector<2x128xf32>
    %48 = arith.addf %47, %34 : vector<2x128xf32>
    %cst_27 = arith.constant 5.000000e-01 : f32
    %49 = vector.broadcast %cst_27 : f32 to vector<2x128xf32>
    %50 = arith.mulf %48, %49 : vector<2x128xf32>
    %51 = arith.truncf %50 : vector<2x128xf32> to vector<2x128xbf16>
    %c0_28 = arith.constant 0 : index
    %c0_29 = arith.constant 0 : index
    %52 = vector.load %arg11[%c0_28, %c0_29] : memref<128x256xbf16, #tpu.memory_space<vmem>>, vector<128x256xbf16>
    %cst_30 = arith.constant dense<0.000000e+00> : vector<2x256xf32>
    %53 = tpu.matmul %51, %52, %cst_30 {dimension_numbers = #tpu.dot_dimension_numbers<[1], [0], [0], [1], [0, 0, 1, 1], [], []>} : vector<2x128xbf16>, vector<128x256xbf16>, vector<2x256xf32> -> vector<2x256xf32>
    %54 = vector.extract_strided_slice %53 {offsets = [0, 0], sizes = [2, 128], strides = [1, 1]} : vector<2x256xf32> to vector<2x128xf32>
    %55 = vector.broadcast %4 : vector<1x128xf32> to vector<2x128xf32>
    %56 = arith.addf %54, %55 : vector<2x128xf32>
    %57 = vector.extract_strided_slice %53 {offsets = [0, 128], sizes = [2, 128], strides = [1, 1]} : vector<2x256xf32> to vector<2x128xf32>
    %58 = vector.broadcast %5 : vector<1x128xf32> to vector<2x128xf32>
    %59 = arith.addf %57, %58 : vector<2x128xf32>
    %c0_31 = arith.constant 0 : index
    %c0_32 = arith.constant 0 : index
    %60 = vector.load %arg12[%c0_31, %c0_32] : memref<2x128xf32, #tpu.memory_space<vmem>>, vector<2x128xf32>
    %cst_33 = arith.constant 5.000000e-01 : f32
    %61 = vector.broadcast %cst_33 : f32 to vector<2x128xf32>
    %62 = arith.mulf %61, %59 : vector<2x128xf32>
    %63 = math.exp %62 : vector<2x128xf32>
    %64 = arith.mulf %60, %63 : vector<2x128xf32>
    %65 = arith.addf %64, %56 : vector<2x128xf32>
    %cst_34 = arith.constant 1.000000e+00 : f32
    %66 = vector.broadcast %cst_34 : f32 to vector<2x128xf32>
    %67 = arith.addf %66, %59 : vector<2x128xf32>
    %68 = arith.mulf %56, %56 : vector<2x128xf32>
    %69 = arith.subf %67, %68 : vector<2x128xf32>
    %70 = math.exp %59 : vector<2x128xf32>
    %71 = arith.subf %69, %70 : vector<2x128xf32>
    %72 = vector.shape_cast %71 : vector<2x128xf32> to vector<1x2x128xf32>
    %cst_35 = arith.constant dense<0.000000e+00> : vector<1xf32>
    %73 = vector.multi_reduction <add>, %72, %cst_35 [1, 2] : vector<1x2x128xf32> to vector<1xf32>
    %74 = vector.shape_cast %73 : vector<1xf32> to vector<1x1x1xf32>
    %75 = vector.extract %74[0, 0, 0] : f32 from vector<1x1x1xf32>
    %cst_36 = arith.constant -2.500000e-01 : f32
    %76 = arith.mulf %cst_36, %75 : f32
    %77 = tpu.concatenate %65, %65, %65, %65, %65, %65, %65, %65 in 0 : vector<2x128xf32>, vector<2x128xf32>, vector<2x128xf32>, vector<2x128xf32>, vector<2x128xf32>, vector<2x128xf32>, vector<2x128xf32>, vector<2x128xf32> -> vector<16x128xf32>
    %78 = arith.truncf %77 : vector<16x128xf32> to vector<16x128xbf16>
    %79 = arith.addf %35, %78 : vector<16x128xbf16>
    %c0_37 = arith.constant 0 : index
    %c0_38 = arith.constant 0 : index
    %80 = vector.load %arg13[%c0_37, %c0_38] : memref<128x128xbf16, #tpu.memory_space<vmem>>, vector<128x128xbf16>
    %cst_39 = arith.constant dense<0.000000e+00> : vector<16x128xf32>
    %81 = tpu.matmul %79, %80, %cst_39 {dimension_numbers = #tpu.dot_dimension_numbers<[1], [0], [0], [1], [0, 0, 1, 1], [], []>} : vector<16x128xbf16>, vector<128x128xbf16>, vector<16x128xf32> -> vector<16x128xf32>
    %82 = vector.broadcast %6 : vector<1x128xf32> to vector<16x128xf32>
    %83 = arith.addf %81, %82 : vector<16x128xf32>
    %cst_40 = arith.constant dense<0xFF800000> : vector<16xf32>
    %84 = vector.multi_reduction <maximumf>, %83, %cst_40 [1] : vector<16x128xf32> to vector<16xf32>
    %85 = vector.shape_cast %84 : vector<16xf32> to vector<16x1xf32>
    %86 = vector.broadcast %85 : vector<16x1xf32> to vector<16x128xf32>
    %87 = arith.subf %83, %86 : vector<16x128xf32>
    %88 = math.exp %87 : vector<16x128xf32>
    %cst_41 = arith.constant dense<0.000000e+00> : vector<16xf32>
    %89 = vector.multi_reduction <add>, %88, %cst_41 [1] : vector<16x128xf32> to vector<16xf32>
    %90 = vector.shape_cast %89 : vector<16xf32> to vector<16x1xf32>
    %91 = vector.broadcast %85 : vector<16x1xf32> to vector<16x128xf32>
    %92 = arith.subf %83, %91 : vector<16x128xf32>
    %93 = math.log %90 : vector<16x1xf32>
    %94 = vector.broadcast %93 : vector<16x1xf32> to vector<16x128xf32>
    %95 = arith.subf %92, %94 : vector<16x128xf32>
    %96 = tpu.iota {dimensions = array<i32: 1>} : vector<16x128xi32>
    %97 = arith.sitofp %96 : vector<16x128xi32> to vector<16x128xf32>
    %98 = vector.broadcast %10 : vector<16x1xf32> to vector<16x128xf32>
    %99 = arith.cmpf oeq, %97, %98 : vector<16x128xf32>
    %100 = arith.extui %99 : vector<16x128xi1> to vector<16x128xi32>
    %101 = arith.sitofp %100 : vector<16x128xi32> to vector<16x128xf32>
    %102 = arith.mulf %95, %101 : vector<16x128xf32>
    %cst_42 = arith.constant dense<0.000000e+00> : vector<16xf32>
    %103 = vector.multi_reduction <add>, %102, %cst_42 [1] : vector<16x128xf32> to vector<16xf32>
    %104 = vector.shape_cast %103 : vector<16xf32> to vector<16x1xf32>
    %105 = arith.mulf %104, %11 : vector<16x1xf32>
    %106 = vector.shape_cast %105 : vector<16x1xf32> to vector<1x16x1xf32>
    %cst_43 = arith.constant dense<0.000000e+00> : vector<1xf32>
    %107 = vector.multi_reduction <add>, %106, %cst_43 [1, 2] : vector<1x16x1xf32> to vector<1xf32>
    %108 = vector.shape_cast %107 : vector<1xf32> to vector<1x1x1xf32>
    %109 = vector.extract %108[0, 0, 0] : f32 from vector<1x1x1xf32>
    %cst_44 = arith.constant 0.000000e+00 : f32
    %110 = arith.subf %cst_44, %109 : f32
    %cst_45 = arith.constant 2.000000e+00 : f32
    %111 = arith.divf %110, %cst_45 : f32
    %112 = vector.broadcast %85 : vector<16x1xf32> to vector<16x128xf32>
    %113 = arith.cmpf oeq, %83, %112 : vector<16x128xf32>
    %cst_46 = arith.constant 1.280000e+02 : f32
    %114 = vector.broadcast %cst_46 : f32 to vector<16x128xf32>
    %115 = arith.select %113, %97, %114 : vector<16x128xi1>, vector<16x128xf32>
    %cst_47 = arith.constant dense<0x7F800000> : vector<16xf32>
    %116 = vector.multi_reduction <minimumf>, %115, %cst_47 [1] : vector<16x128xf32> to vector<16xf32>
    %117 = vector.shape_cast %116 : vector<16xf32> to vector<16x1xf32>
    %118 = arith.cmpf oeq, %117, %10 : vector<16x1xf32>
    %119 = arith.extui %118 : vector<16x1xi1> to vector<16x1xi32>
    %120 = arith.sitofp %119 : vector<16x1xi32> to vector<16x1xf32>
    %121 = arith.mulf %120, %11 : vector<16x1xf32>
    %122 = vector.shape_cast %121 : vector<16x1xf32> to vector<1x16x1xf32>
    %cst_48 = arith.constant dense<0.000000e+00> : vector<1xf32>
    %123 = vector.multi_reduction <add>, %122, %cst_48 [1, 2] : vector<1x16x1xf32> to vector<1xf32>
    %124 = vector.shape_cast %123 : vector<1xf32> to vector<1x1x1xf32>
    %125 = vector.extract %124[0, 0, 0] : f32 from vector<1x1x1xf32>
    %126 = vector.shape_cast %11 : vector<16x1xf32> to vector<1x16x1xf32>
    %cst_49 = arith.constant dense<0.000000e+00> : vector<1xf32>
    %127 = vector.multi_reduction <add>, %126, %cst_49 [1, 2] : vector<1x16x1xf32> to vector<1xf32>
    %128 = vector.shape_cast %127 : vector<1xf32> to vector<1x1x1xf32>
    %129 = vector.extract %128[0, 0, 0] : f32 from vector<1x1x1xf32>
    %cst_50 = arith.constant 1.000000e+00 : f32
    %130 = arith.maximumf %129, %cst_50 : f32
    %131 = arith.divf %125, %130 : f32
    %132 = arith.truncf %65 : vector<2x128xf32> to vector<2x128xbf16>
    %c0_51 = arith.constant 0 : index
    %c0_52 = arith.constant 0 : index
    %133 = vector.load %arg14[%c0_51, %c0_52] : memref<128x128xbf16, #tpu.memory_space<vmem>>, vector<128x128xbf16>
    %cst_53 = arith.constant dense<0.000000e+00> : vector<2x128xf32>
    %134 = tpu.matmul %132, %133, %cst_53 {dimension_numbers = #tpu.dot_dimension_numbers<[1], [0], [0], [1], [0, 0, 1, 1], [], []>} : vector<2x128xbf16>, vector<128x128xbf16>, vector<2x128xf32> -> vector<2x128xf32>
    %135 = vector.broadcast %7 : vector<1x128xf32> to vector<2x128xf32>
    %136 = arith.addf %134, %135 : vector<2x128xf32>
    %137 = tpu.iota {dimensions = array<i32: 1>} : vector<2x128xi32>
    %c64_i32 = arith.constant 64 : i32
    %138 = vector.broadcast %c64_i32 : i32 to vector<2x128xi32>
    %139 = arith.cmpi slt, %137, %138 : vector<2x128xi32>
    %140 = arith.extui %139 : vector<2x128xi1> to vector<2x128xi32>
    %141 = arith.sitofp %140 : vector<2x128xi32> to vector<2x128xf32>
    %c0_54 = arith.constant 0 : index
    %c0_55 = arith.constant 0 : index
    %142 = vector.load %arg15[%c0_54, %c0_55] : memref<2x128xf32, #tpu.memory_space<vmem>>, vector<2x128xf32>
    %cst_56 = arith.constant 0.000000e+00 : f32
    %143 = vector.broadcast %cst_56 : f32 to vector<2x128xf32>
    %144 = arith.maximumf %136, %143 : vector<2x128xf32>
    %145 = math.absf %136 : vector<2x128xf32>
    %cst_57 = arith.constant 0.000000e+00 : f32
    %146 = vector.broadcast %cst_57 : f32 to vector<2x128xf32>
    %147 = arith.subf %146, %145 : vector<2x128xf32>
    %148 = math.exp %147 : vector<2x128xf32>
    %cst_58 = arith.constant 1.000000e+00 : f32
    %149 = vector.broadcast %cst_58 : f32 to vector<2x128xf32>
    %150 = arith.addf %149, %148 : vector<2x128xf32>
    %151 = math.log %150 : vector<2x128xf32>
    %152 = arith.addf %144, %151 : vector<2x128xf32>
    %153 = arith.mulf %142, %136 : vector<2x128xf32>
    %154 = arith.subf %152, %153 : vector<2x128xf32>
    %155 = arith.mulf %154, %141 : vector<2x128xf32>
    %156 = vector.shape_cast %155 : vector<2x128xf32> to vector<1x2x128xf32>
    %cst_59 = arith.constant dense<0.000000e+00> : vector<1xf32>
    %157 = vector.multi_reduction <add>, %156, %cst_59 [1, 2] : vector<1x2x128xf32> to vector<1xf32>
    %158 = vector.shape_cast %157 : vector<1xf32> to vector<1x1x1xf32>
    %159 = vector.extract %158[0, 0, 0] : f32 from vector<1x1x1xf32>
    %cst_60 = arith.constant 1.280000e+02 : f32
    %160 = arith.divf %159, %cst_60 : f32
    %cst_61 = arith.constant 0.000000e+00 : f32
    %161 = vector.broadcast %cst_61 : f32 to vector<2x128xf32>
    %162 = arith.cmpf ogt, %136, %161 : vector<2x128xf32>
    %163 = arith.extui %162 : vector<2x128xi1> to vector<2x128xi32>
    %164 = arith.sitofp %163 : vector<2x128xi32> to vector<2x128xf32>
    %165 = arith.mulf %164, %141 : vector<2x128xf32>
    %166 = arith.mulf %165, %142 : vector<2x128xf32>
    %167 = vector.shape_cast %166 : vector<2x128xf32> to vector<1x2x128xf32>
    %cst_62 = arith.constant dense<0.000000e+00> : vector<1xf32>
    %168 = vector.multi_reduction <add>, %167, %cst_62 [1, 2] : vector<1x2x128xf32> to vector<1xf32>
    %169 = vector.shape_cast %168 : vector<1xf32> to vector<1x1x1xf32>
    %170 = vector.extract %169[0, 0, 0] : f32 from vector<1x1x1xf32>
    %171 = vector.shape_cast %142 : vector<2x128xf32> to vector<1x2x128xf32>
    %cst_63 = arith.constant dense<0.000000e+00> : vector<1xf32>
    %172 = vector.multi_reduction <add>, %171, %cst_63 [1, 2] : vector<1x2x128xf32> to vector<1xf32>
    %173 = vector.shape_cast %172 : vector<1xf32> to vector<1x1x1xf32>
    %174 = vector.extract %173[0, 0, 0] : f32 from vector<1x1x1xf32>
    %cst_64 = arith.constant 1.000000e+00 : f32
    %175 = arith.maximumf %174, %cst_64 : f32
    %176 = arith.divf %170, %175 : f32
    %177 = vector.shape_cast %165 : vector<2x128xf32> to vector<1x2x128xf32>
    %cst_65 = arith.constant dense<0.000000e+00> : vector<1xf32>
    %178 = vector.multi_reduction <add>, %177, %cst_65 [1, 2] : vector<1x2x128xf32> to vector<1xf32>
    %179 = vector.shape_cast %178 : vector<1xf32> to vector<1x1x1xf32>
    %180 = vector.extract %179[0, 0, 0] : f32 from vector<1x1x1xf32>
    %cst_66 = arith.constant 1.000000e+00 : f32
    %181 = arith.maximumf %180, %cst_66 : f32
    %182 = arith.divf %170, %181 : f32
    %c0_67 = arith.constant 0 : index
    %183 = memref.load %arg0[%c0_67] : memref<1xf32, #tpu.memory_space<smem>>
    %184 = arith.mulf %76, %183 : f32
    %185 = arith.addf %184, %111 : f32
    %186 = tpu.iota {dimensions = array<i32: 0>} : vector<8x128xi32>
    %c0_i32 = arith.constant 0 : i32
    %187 = vector.broadcast %c0_i32 : i32 to vector<8x128xi32>
    %188 = arith.cmpi eq, %186, %187 : vector<8x128xi32>
    %189 = arith.extui %188 : vector<8x128xi1> to vector<8x128xi32>
    %190 = arith.sitofp %189 : vector<8x128xi32> to vector<8x128xf32>
    %191 = vector.broadcast %185 : f32 to vector<8x128xf32>
    %192 = arith.mulf %190, %191 : vector<8x128xf32>
    %c1_i32 = arith.constant 1 : i32
    %193 = vector.broadcast %c1_i32 : i32 to vector<8x128xi32>
    %194 = arith.cmpi eq, %186, %193 : vector<8x128xi32>
    %195 = arith.extui %194 : vector<8x128xi1> to vector<8x128xi32>
    %196 = arith.sitofp %195 : vector<8x128xi32> to vector<8x128xf32>
    %197 = vector.broadcast %131 : f32 to vector<8x128xf32>
    %198 = arith.mulf %196, %197 : vector<8x128xf32>
    %199 = arith.addf %192, %198 : vector<8x128xf32>
    %c2_i32 = arith.constant 2 : i32
    %200 = vector.broadcast %c2_i32 : i32 to vector<8x128xi32>
    %201 = arith.cmpi eq, %186, %200 : vector<8x128xi32>
    %202 = arith.extui %201 : vector<8x128xi1> to vector<8x128xi32>
    %203 = arith.sitofp %202 : vector<8x128xi32> to vector<8x128xf32>
    %204 = vector.broadcast %76 : f32 to vector<8x128xf32>
    %205 = arith.mulf %203, %204 : vector<8x128xf32>
    %206 = arith.addf %199, %205 : vector<8x128xf32>
    %c3_i32 = arith.constant 3 : i32
    %207 = vector.broadcast %c3_i32 : i32 to vector<8x128xi32>
    %208 = arith.cmpi eq, %186, %207 : vector<8x128xi32>
    %209 = arith.extui %208 : vector<8x128xi1> to vector<8x128xi32>
    %210 = arith.sitofp %209 : vector<8x128xi32> to vector<8x128xf32>
    %211 = vector.broadcast %160 : f32 to vector<8x128xf32>
    %212 = arith.mulf %210, %211 : vector<8x128xf32>
    %213 = arith.addf %206, %212 : vector<8x128xf32>
    %c4_i32 = arith.constant 4 : i32
    %214 = vector.broadcast %c4_i32 : i32 to vector<8x128xi32>
    %215 = arith.cmpi eq, %186, %214 : vector<8x128xi32>
    %216 = arith.extui %215 : vector<8x128xi1> to vector<8x128xi32>
    %217 = arith.sitofp %216 : vector<8x128xi32> to vector<8x128xf32>
    %218 = vector.broadcast %111 : f32 to vector<8x128xf32>
    %219 = arith.mulf %217, %218 : vector<8x128xf32>
    %220 = arith.addf %213, %219 : vector<8x128xf32>
    %c5_i32 = arith.constant 5 : i32
    %221 = vector.broadcast %c5_i32 : i32 to vector<8x128xi32>
    %222 = arith.cmpi eq, %186, %221 : vector<8x128xi32>
    %223 = arith.extui %222 : vector<8x128xi1> to vector<8x128xi32>
    %224 = arith.sitofp %223 : vector<8x128xi32> to vector<8x128xf32>
    %225 = vector.broadcast %176 : f32 to vector<8x128xf32>
    %226 = arith.mulf %224, %225 : vector<8x128xf32>
    %227 = arith.addf %220, %226 : vector<8x128xf32>
    %c6_i32 = arith.constant 6 : i32
    %228 = vector.broadcast %c6_i32 : i32 to vector<8x128xi32>
    %229 = arith.cmpi eq, %186, %228 : vector<8x128xi32>
    %230 = arith.extui %229 : vector<8x128xi1> to vector<8x128xi32>
    %231 = arith.sitofp %230 : vector<8x128xi32> to vector<8x128xf32>
    %232 = vector.broadcast %182 : f32 to vector<8x128xf32>
    %233 = arith.mulf %231, %232 : vector<8x128xf32>
    %234 = arith.addf %227, %233 : vector<8x128xf32>
    %c0_68 = arith.constant 0 : index
    %c0_69 = arith.constant 0 : index
    %235 = vector.load %arg17[%c0_68, %c0_69] : memref<8x128xf32, #tpu.memory_space<vmem>>, vector<8x128xf32>
    tpu.vector_store %arg17[%c0_68, %c0_69], %234 {strides = array<i32>} : memref<8x128xf32, #tpu.memory_space<vmem>>, vector<8x128xf32>,
    return
  }
}

</mosaic_0001>

<bundles_post_ra>
// kernel: tpu_custom_call.1
= control target key start
LH: loop header
LB: loop body
LE: loop exit
PB: predicated region body
PF: predicated region fallthrough
CT: control target
= control target key end

     0   :  { %s2247_s0 = inlined_call_operand.<no memory space> [shape: f32[1], index: 0, kind: input, shape index: {}]   ;;  %s2248_s1 = inlined_call_operand.hbm [shape: bf16[16,16], index: 1, kind: input, shape index: {}]   ;;  %s2249_s2 = inlined_call_operand.hbm [shape: bf16[16,128], index: 2, kind: input, shape index: {}]   ;;  %s2250_s3 = inlined_call_operand.hbm [shape: bf16[128,128], index: 3, kind: input, shape index: {}]   ;;  %s2251_s4 = inlined_call_operand.hbm [shape: bf16[128,128], index: 4, kind: input, shape index: {}]   ;;  %s2252_s5 = inlined_call_operand.hbm [shape: bf16[2,16], index: 5, kind: input, shape index: {}]   ;;  %s2253_s6 = inlined_call_operand.hbm [shape: bf16[16,128], index: 6, kind: input, shape index: {}]   ;;  %s2254_s7 = inlined_call_operand.hbm [shape: f32[16,128], index: 7, kind: input, shape index: {}]   ;;  %s2255_s8 = inlined_call_operand.vmem [shape: bf16[2,16], index: 8, kind: input, shape index: {}]   ;;  %s2256_s9 = inlined_call_operand.vmem [shape: f32[2,128], index: 9, kind: input, shape index: {}]   ;;  %s2257_s10 = inlined_call_operand.hbm [shape: bf16[128,128], index: 10, kind: input, shape index: {}]   ;;  %s2258_s11 = inlined_call_operand.hbm [shape: bf16[128,256], index: 11, kind: input, shape index: {}]   ;;  %s2259_s12 = inlined_call_operand.vmem [shape: f32[2,128], index: 12, kind: input, shape index: {}]   ;;  %s2260_s13 = inlined_call_operand.hbm [shape: bf16[128,128], index: 13, kind: input, shape index: {}]   ;;  %s2261_s14 = inlined_call_operand.hbm [shape: bf16[128,128], index: 14, kind: input, shape index: {}]   ;;  %s2262_s15 = inlined_call_operand.vmem [shape: f32[2,128], index: 15, kind: input, shape index: {}]   ;;  %s2263_s16 = inlined_call_operand.vmem [shape: f32[8,128], index: 16, kind: input, shape index: {}]   ;;  %s2264_s17 = inlined_call_operand.hbm [shape: f32[8,128], index: 17, kind: output, shape index: {}]  }
   0x1   :  { %2265 = sst [smem:[#allocation29_spill]] %s2247_s0 }
   0x2   :  { %2266 = sst [smem:[#allocation30_spill]] %s2248_s1 }
   0x3   :  { %23 = vsyncpa [#allocation4], 0 }
   0x4   :  { %24 = vsyncpa [#allocation7], 0 }
   0x5   :  { %25 = vsyncpa [#allocation10], 0 }
   0x6   :  { %26 = vsyncpa [#allocation13], 0 }
   0x7   :  { %27 = vsyncpa [#allocation16], 0 }
   0x8   :  { %28 = vsyncpa [#allocation19], 0 }
   0x9   :  { %29 = vsyncpa [#allocation5], 0  ;;  %s49_s26 = sshll.u32 %s2249_s2, 4  ;;  %s1934_s27 = smov [#allocation6]   ;;  %s50_s26 = int_to_ptr.hbm [resolvable:$true] %s49_s26 }
   0xa   :  { %s51_s28 = sshll.u32 %s1934_s27, 4  ;;  %s75_s30 = sshll.u32 %s2251_s4, 4  ;;  %s52_s28 = int_to_ptr.vmem [resolvable:$true] %s51_s28  ;;  %s76_s30 = int_to_ptr.hbm [resolvable:$true] %s75_s30 }
   0xb   :  { %s1935_s18 = smov 64   ;;  %s1936_s19 = smov 4  }
   0xc   :  { %57 = dma.hbm_to_vmem [thread:$0]  %s50_s26, 128, %s52_s28, [#allocation7], %s1935_s18, %s1935_s18, %s1936_s19  }
   0xd   :  { %s1937_s1 = smov [#allocation9]   ;;  %s99_s2 = sshll.u32 %s2253_s6, 4  ;;  %s100_s2 = int_to_ptr.hbm [resolvable:$true] %s99_s2 }
   0xe   :  { %s77_s20 = sshll.u32 %s1937_s1, 4  ;;  %s129_s24 = sshll.u32 %s2257_s10, 4  ;;  %s78_s20 = int_to_ptr.vmem [resolvable:$true] %s77_s20  ;;  %s130_s24 = int_to_ptr.hbm [resolvable:$true] %s129_s24 }
   0xf   :  { %83 = dma.hbm_to_vmem [thread:$0]  %s76_s30, 1024, %s78_s20, [#allocation10], %s1935_s18, %s1935_s18, %s1936_s19  }
  0x10   :  { %s1938_s25 = smov [#allocation12]   ;;  %s1939_s26 = smov [#allocation15]  }
  0x11   :  { %s101_s27 = sshll.u32 %s1938_s25, 4  ;;  %s131_s6 = sshll.u32 %s1939_s26, 4  ;;  %s102_s27 = int_to_ptr.vmem [resolvable:$true] %s101_s27  ;;  %s132_s6 = int_to_ptr.vmem [resolvable:$true] %s131_s6 }
  0x12   :  { %107 = dma.hbm_to_vmem [thread:$0]  %s100_s2, 128, %s102_s27, [#allocation13], %s1935_s18, %s1935_s18, %s1936_s19  }
  0x13   :  { %s157_s0 = sshll.u32 %s2260_s13, 4  ;;  %s2267_s1 = sld [smem:[#allocation30_spill]]  ;;  %s158_s0 = int_to_ptr.hbm [resolvable:$true] %s157_s0 }
  0x14   :  { %137 = dma.hbm_to_vmem [thread:$0]  %s130_s24, 1024, %s132_s6, [#allocation16], %s1935_s18, %s1935_s18, %s1936_s19  }
  0x15   :  { %s1940_s21 = smov [#allocation18]   ;;  %s1941_s2 = smov [#allocation3]  }
  0x16   :  { %s159_s22 = sshll.u32 %s1940_s21, 4  ;;  %s38_s13 = sshll.u32 %s1941_s2, 4  ;;  %s160_s22 = int_to_ptr.vmem [resolvable:$true] %s159_s22  ;;  %s39_s13 = int_to_ptr.vmem [resolvable:$true] %s38_s13 }
  0x17   :  { %165 = dma.hbm_to_vmem [thread:$0]  %s158_s0, 1024, %s160_s22, [#allocation19], %s1935_s18, %s1935_s18, %s1936_s19  }
  0x18   :  { %s62_s25 = sshll.u32 %s2250_s3, 4  ;;  %s89_s26 = sshll.u32 %s2252_s5, 4  ;;  %s63_s25 = int_to_ptr.hbm [resolvable:$true] %s62_s25  ;;  %s90_s26 = int_to_ptr.hbm [resolvable:$true] %s89_s26 }
  0x19   :  { %s36_s20 = sshll.u32 %s2267_s1, 4  ;;  %s1942_s6 = smov [#allocation8]   ;;  %s37_s20 = int_to_ptr.hbm [resolvable:$true] %s36_s20 }
  0x1a   :  { %44 = dma.hbm_to_vmem [thread:$0]  %s37_s20, 128, %s39_s13, [#allocation4], %s1935_s18, %s1935_s18, %s1936_s19  }
  0x1b   :  { %s64_s28 = sshll.u32 %s1942_s6, 4  ;;  %s1943_s29 = smov [#allocation11]   ;;  %s65_s28 = int_to_ptr.vmem [resolvable:$true] %s64_s28 }
  0x1c   :  { %70 = dma.hbm_to_vmem [thread:$0]  %s63_s25, 1024, %s65_s28, [#allocation7], %s1935_s18, %s1935_s18, %s1936_s19  }
  0x1d   :  { %s91_s3 = sshll.u32 %s1943_s29, 4  ;;  %s112_s30 = sshll.u32 %s2254_s7, 4  ;;  %s92_s3 = int_to_ptr.vmem [resolvable:$true] %s91_s3  ;;  %s113_s30 = int_to_ptr.hbm [resolvable:$true] %s112_s30 }
  0x1e   :  { %94 = dma.hbm_to_vmem [thread:$0]  %s90_s26, 16, %s92_s3, [#allocation10]  }
  0x1f   :  { %s1944_s1 = smov [#allocation14]   ;;  %s142_s22 = sshll.u32 %s2258_s11, 4  ;;  %s143_s22 = int_to_ptr.hbm [resolvable:$true] %s142_s22 }
  0x20   :  { %s114_s20 = sshll.u32 %s1944_s1, 4  ;;  %s1945_s2 = smov 128   ;;  %s115_s20 = int_to_ptr.vmem [resolvable:$true] %s114_s20 }
  0x21   :  { %s1946_s13 = smov 8   ;;  %s1947_s4 = smov [#allocation17]  }
  0x22   :  { %120 = dma.hbm_to_vmem [thread:$0]  %s113_s30, 256, %s115_s20, [#allocation13], %s1945_s2, %s1945_s2, %s1946_s13  }
  0x23   :  { %s144_s23 = sshll.u32 %s1947_s4, 4  ;;  %s170_s7 = sshll.u32 %s2261_s14, 4  ;;  %s145_s23 = int_to_ptr.vmem [resolvable:$true] %s144_s23  ;;  %s171_s7 = int_to_ptr.hbm [resolvable:$true] %s170_s7 }
  0x24   :  { %150 = dma.hbm_to_vmem [thread:$0]  %s143_s22, 2048, %s145_s23, [#allocation16], %s1945_s2, %s1945_s2, %s1946_s13  }
  0x25   :  { %s1948_s27 = smov [#allocation20]  }
  0x26   :  { %s172_s26 = sshll.u32 %s1948_s27, 4  ;;  %s173_s26 = int_to_ptr.vmem [resolvable:$true] %s172_s26 }
  0x27   :  { %178 = dma.hbm_to_vmem [thread:$0]  %s171_s7, 1024, %s173_s26, [#allocation19], %s1935_s18, %s1935_s18, %s1936_s19  }
  0x28   :  { %1920 = dma.done.wait [#allocation4], 128  }
  0x29   :  { %1921 = vsyncadd [#allocation4], 4294967168 }
  0x2a   :  { %1922 = dma.done.wait [#allocation7], 1152  }
  0x2b   :  { %1923 = vsyncadd [#allocation7], 4294966144 }
  0x2c   :  { %1924 = dma.done.wait [#allocation10], 1040  }
  0x2d   :  { %1925 = vsyncadd [#allocation10], 4294966256 }
  0x2e   :  { %1926 = dma.done.wait [#allocation13], 384  }
  0x2f   :  { %1927 = vsyncadd [#allocation13], 4294966912 }
  0x30   :  { %1928 = dma.done.wait [#allocation16], 3072  }
  0x31   :  { %1929 = vsyncadd [#allocation16], 4294964224 }
  0x32   :  { %1930 = dma.done.wait [#allocation19], 2048  }
  0x33   :  { %1931 = vsyncadd [#allocation19], 4294965248  ;;  %v1489_v0 = vld [vmem:[#allocation6] sm:$0xff]  ;;  %v1488_v2 = vld [vmem:[#allocation3] sm:$0xff]  ;;  %vm247_vm0 = vcmask 130048   ;;  %v1949_v12 = vmov 0  }
  0x34   :  { %v1497_v1 = vld [vmem:[#allocation8 + $0x38] sm:$0xff]  ;;  %258 = vmatpush.bf16.msra.mxu0 %v1489_v0  ;;  %v1496_v3 = vld [vmem:[#allocation8 + $0x30] sm:$0xff]  ;;  %v1495_v4 = vld [vmem:[#allocation8 + $0x28] sm:$0xff]  ;;  %1601 = vset.pattern.permute.xlu0 %v1949_v12  ;;  %v1950_v27 = vmov 839922192   ;;  %v1951_v29 = vmov 1  }
  0x35   :  { %331 = vmatpush.bf16.msra.mxu1 %v1497_v1  ;;  %v1494_v5 = vld [vmem:[#allocation8 + $0x20] sm:$0xff]  ;;  %v1493_v6 = vld [vmem:[#allocation8 + $0x18] sm:$0xff]  ;;  %v1492_v7 = vld [vmem:[#allocation8 + $0x10] sm:$0xff]  ;;  %v461_v28 = vunpack.c.l.s4 %v1950_v27  ;;  %1602 = vset.pattern.permute.xlu1 %v1951_v29  ;;  %vm742_vm1 = vcmask 1043456   ;;  %vm722_vm2 = vcmask 1041408   ;;  %vm744_vm3 = vcmask 1045504  }
  0x36   :  { %v1491_v8 = vld [vmem:[#allocation8 + $0x8] sm:$0xff]  ;;  %v1490_v9 = vld [vmem:[#allocation8] sm:$0xff]  ;;  %v1505_v11 = vld [vmem:[#allocation9 + $0x38] sm:$0xff]  ;;  %1604 = vset.pattern.permute.xlu2 %v1951_v29  ;;  %s1954_s29 = smov 126   ;;  %vm885_vm12 = vcmask 7168   ;;  %s1957_s21 = smov 1.0  }
  0x37   :  { %1248 = vmatmul.msk.bf16.vlgmr.msra.gmra.mxu0 %vm247_vm0, %v1488_v2  ;;  %v2107_v10 = vld [vmem:[#allocation14] sm:$0xff]  ;;  %413 = vmatpush.bf16.msra.mxu2 %v1505_v11  ;;  %v2111_v15 = vld [vmem:[#allocation14 + $0x8] sm:$0xff]  ;;  %v1502_v18 = vld [vmem:[#allocation9 + $0x20] sm:$0xff]  ;;  %v462_v31 = vunpack.c.0.s8 %v461_v28  ;;  %s2268_s23 = sld [smem:[#allocation29_spill]] }
  0x38   :  { %v453_v13 = vpack.c.bf16 %v2107_v10, %v2107_v10  ;;  %v1504_v14 = vld [vmem:[#allocation9 + $0x30] sm:$0xff]  ;;  %v1503_v16 = vld [vmem:[#allocation9 + $0x28] sm:$0xff]  ;;  %v454_v17 = vpack.c.bf16 %v2111_v15, %v2111_v15  ;;  %v1501_v22 = vld [vmem:[#allocation9 + $0x18] sm:$0xff] }
  0x39   :  { %332 = vmatpush.bf16.msra.mxu1 %v1496_v3  ;;  %v1500_v23 = vld [vmem:[#allocation9 + $0x10] sm:$0xff]  ;;  %v1499_v24 = vld [vmem:[#allocation9 + $0x8] sm:$0xff]  ;;  %v1498_v25 = vld [vmem:[#allocation9] sm:$0xff] }
  0x3a   :  { %457 = vperm.xlu0 %1601, %v453_v13   ;;  %v231_v30 = vld [vmem:[%s2256_s9] sm:$0x3]  ;;  %v2118_v32 = vld [vmem:[#allocation12] sm:$0xff]   ;;  %v1513_v60 = vld [vmem:[#allocation15 + $0x38] sm:$0xff] }
  0x3b   :  { %414 = vmatpush.bf16.msra.mxu2 %v1504_v14  ;;  %498 = vperm.xlu1 %1602, %v231_v30   ;;  %v1548_v34 = vunpack.c.l.bf16 %v2118_v32  ;;  %v1549_v37 = vunpack.c.h.bf16 %v2118_v32  ;;  %v2129_v43 = vld [vmem:[%s2263_s16] sm:$0xff]  ;;  %v427_v62 = vld [vmem:[#allocation11] sm:$0x1]  ;;  %v1511_v0 = vld [vmem:[#allocation15 + $0x28] sm:$0xff] }
  0x3c   :  { %v480_v45 = vld [vmem:[%s2255_s8] sm:$0x1]  ;;  %v282_v46 = vperm.slane %v2129_v43, 0  ;;  %v364_v55 = vperm.slane %v2129_v43, 1  ;;  %v1510_v1 = vld [vmem:[#allocation15 + $0x20] sm:$0xff]  ;;  %v1509_v2 = vld [vmem:[#allocation15 + $0x18] sm:$0xff] }
  0x3d   :  { %333 = vmatpush.bf16.msra.mxu1 %v1495_v4  ;;  %v1512_v63 = vld [vmem:[#allocation15 + $0x30] sm:$0xff]  ;;  %v1507_v4 = vld [vmem:[#allocation15 + $0x8] sm:$0xff]  ;;  %v1529_v11 = vld [vmem:[#allocation17 + $0x74] sm:$0xf0] }
  0x3e   :  { %v1508_v3 = vld [vmem:[#allocation15 + $0x10] sm:$0xff]  ;;  %v1407_v14 = vld [vmem:[#allocation17 + $0x78] sm:$0xf0]  ;;  %v1381_v28 = vld [vmem:[#allocation17 + $0x40] sm:$0xf] }
  0x3f   :  { %415 = vmatpush.bf16.msra.mxu2 %v1503_v16  ;;  %v1397_v16 = vld [vmem:[#allocation17 + $0x60] sm:$0xf]  ;;  %v1391_v27 = vld [vmem:[#allocation17 + $0x58] sm:$0xf0] }
  0x41   :  { %334 = vmatpush.bf16.msra.mxu1 %v1494_v5 }
  0x42   :  { %466 = vperm.xlu0 %1601, %v454_v17   ;;  %v1527_v17 = vld [vmem:[#allocation17 + $0x64] sm:$0xf0] }
  0x43   :  { %416 = vmatpush.bf16.msra.mxu2 %v1502_v18  ;;  %1603 = vset.pattern.permute.xlu1 %v1949_v12  ;;  %v1528_v12 = vld [vmem:[#allocation17 + $0x74] sm:$0xf] }
  0x44   :  { %447 = vperm.xlu1 %1603, %v231_v30   ;;  %v1410_v18 = vor.u32 %v1528_v12, %v1407_v14  ;;  %v1537_v14 = vld [vmem:[#allocation18 + $0x38] sm:$0xff] }
  0x45   :  { %335 = vmatpush.bf16.msra.mxu1 %v1493_v6 }
  0x47   :  { %417 = vmatpush.bf16.msra.mxu2 %v1501_v22 }
  0x49   :  { %336 = vmatpush.bf16.msra.mxu1 %v1492_v7  ;;  %v1506_v7 = vld [vmem:[#allocation15] sm:$0xff] }
  0x4a   :  { %1605 = vset.pattern.permute.xlu0 %v1951_v29  ;;  %v1523_v29 = vld [vmem:[#allocation17 + $0x44] sm:$0xf0] }
  0x4b   :  { %418 = vmatpush.bf16.msra.mxu2 %v1500_v23  ;;  %v1389_v23 = vld [vmem:[#allocation17 + $0x50] sm:$0xf] }
  0x4d   :  { %337 = vmatpush.bf16.msra.mxu1 %v1491_v8 }
  0x4f   :  { %419 = vmatpush.bf16.msra.mxu2 %v1499_v24  ;;  %v1525_v24 = vld [vmem:[#allocation17 + $0x54] sm:$0xf0] }
  0x51   :  { %338 = vmatpush.bf16.msra.mxu1 %v1490_v9  ;;  %v1405_v9 = vld [vmem:[#allocation17 + $0x70] sm:$0xf] }
  0x52   :  { %v1406_v13 = vor.u32 %v1529_v11, %v1405_v9 }
  0x53   :  { %420 = vmatpush.bf16.msra.mxu2 %v1498_v25  ;;  %v1524_v25 = vld [vmem:[#allocation17 + $0x54] sm:$0xf] }
  0x54   :  { %v1394_v30 = vor.u32 %v1524_v25, %v1391_v27  ;;  %v1532_v25 = vld [vmem:[#allocation18 + $0x10] sm:$0xff]  ;;  %v1530_v27 = vld [vmem:[#allocation18] sm:$0xff] }
  0x55   :  { %693 = vmatpush.bf16.msrb.mxu1 %v1410_v18  ;;  %v1541_v18 = vld [vmem:[#allocation20 + $0x18] sm:$0xff] }
  0x57   :  { %816 = vmatpush.bf16.msrb.mxu2 %v1537_v14 }
  0xac   :  { %v458_v26 = vpop.permute.xlu0 %457 }
  0xad   :  { %v463_v33 = vperm.slane %v458_v26, %v462_v31  ;;  %v499_v5 = vpop.permute.xlu1 %498  ;;  %v1390_v26 = vor.u32 %v1525_v24, %v1389_v23  ;;  %v1533_v23 = vld [vmem:[#allocation18 + $0x18] sm:$0xff]  ;;  %v1538_v24 = vld [vmem:[#allocation20] sm:$0xff] }
  0xaf   :  { %v475_v35 = vunpack.c.l.bf16 %v463_v33  ;;  %v1383_v33 = vld [vmem:[#allocation17 + $0x48] sm:$0xf0] }
  0xb1   :  { %v477_v39 = vmul.f32 %v1548_v34, %v475_v35  ;;  %v1382_v35 = vor.u32 %v1523_v29, %v1381_v28  ;;  %v706_v28 = vperm.slane %v2129_v43, 3  ;;  %v708_v29 = vperm.slane %v2129_v43, 4 }
  0xb4   :  { %v260_v19 = vpop.f32.mrf.mxu0  ;;  %v467_v36 = vpop.permute.xlu0 %466 }
  0xb5   :  { %v472_v38 = vperm.slane %v467_v36, %v462_v31  ;;  %v1522_v31 = vld [vmem:[#allocation17 + $0x44] sm:$0xf] }
  0xb6   :  { %v1386_v36 = vor.u32 %v1522_v31, %v1383_v33 }
  0xb7   :  { %v476_v40 = vunpack.c.l.bf16 %v472_v38  ;;  %v1373_v38 = vld [vmem:[#allocation17 + $0x30] sm:$0xf] }
  0xb9   :  { %v478_v41 = vmul.f32 %v1549_v37, %v476_v40  ;;  %v1520_v40 = vld [vmem:[#allocation17 + $0x34] sm:$0xf] }
  0xbb   :  { %v479_v42 = vpack.c.bf16 %v478_v41, %v477_v39  ;;  %v1521_v39 = vld [vmem:[#allocation17 + $0x34] sm:$0xf0]  ;;  %v1375_v41 = vld [vmem:[#allocation17 + $0x38] sm:$0xf0] }
  0xbc   :  { %v262_v20 = vpop.f32.mrf.mxu0 }
  0xbd   :  { %v265_v21 = vpack.c.bf16 %v262_v20, %v260_v19  ;;  %491 = vmatpush.bf16.msrb.mxu0 %v479_v42  ;;  %v1526_v19 = vld [vmem:[#allocation17 + $0x64] sm:$0xf]  ;;  %v1399_v20 = vld [vmem:[#allocation17 + $0x68] sm:$0xf0]  ;;  %v1374_v42 = vor.u32 %v1521_v39, %v1373_v38 }
  0xbe   :  { %v1402_v22 = vor.u32 %v1526_v19, %v1399_v20  ;;  %v1535_v19 = vld [vmem:[#allocation18 + $0x28] sm:$0xff]  ;;  %v1540_v20 = vld [vmem:[#allocation20 + $0x10] sm:$0xff] }
  0xbf   :  { %339 = vmatmul.bf16.vlgmr.msra.gmra.mxu1 %v265_v21  ;;  %v1398_v21 = vor.u32 %v1527_v17, %v1397_v16  ;;  %v1542_v16 = vld [vmem:[#allocation20 + $0x20] sm:$0xff]  ;;  %v1536_v17 = vld [vmem:[#allocation18 + $0x30] sm:$0xff] }
  0xc0   :  { %1314 = vmatmul.msk.bf16.vlgmr.msrb.gmra.mxu0 %vm247_vm0, %v480_v45  ;;  %694 = vmatpush.bf16.msrb.mxu1 %v1402_v22  ;;  %v1365_v45 = vld [vmem:[#allocation17 + $0x20] sm:$0xf]  ;;  %v1539_v22 = vld [vmem:[#allocation20 + $0x8] sm:$0xff] }
  0xc1   :  { %680 = vmatpush.bf16.msra.mxu0 %v1406_v13  ;;  %817 = vmatpush.bf16.msrb.mxu2 %v1536_v17 }
  0xc4   :  { %695 = vmatpush.bf16.msrb.mxu1 %v1394_v30 }
  0xc5   :  { %681 = vmatpush.bf16.msra.mxu0 %v1398_v21  ;;  %818 = vmatpush.bf16.msrb.mxu2 %v1535_v19  ;;  %v1534_v21 = vld [vmem:[#allocation18 + $0x20] sm:$0xff] }
  0xc8   :  { %696 = vmatpush.bf16.msrb.mxu1 %v1386_v36 }
  0xc9   :  { %682 = vmatpush.bf16.msra.mxu0 %v1390_v26  ;;  %819 = vmatpush.bf16.msrb.mxu2 %v1534_v21  ;;  %v1531_v26 = vld [vmem:[#allocation18 + $0x8] sm:$0xff]  ;;  %v1952_v21 = vmov 0.0  }
  0xcd   :  { %683 = vmatpush.bf16.msra.mxu0 %v1382_v35  ;;  %820 = vmatpush.bf16.msrb.mxu2 %v1533_v23 }
  0xd1   :  { %684 = vmatpush.bf16.msra.mxu0 %v1374_v42  ;;  %821 = vmatpush.bf16.msrb.mxu2 %v1532_v25 }
  0xd5   :  { %822 = vmatpush.bf16.msrb.mxu2 %v1531_v26 }
  0xd9   :  { %823 = vmatpush.bf16.msrb.mxu2 %v1530_v27 }
 0x13c   :  { %v340_v44 = vpop.f32.mrf.mxu1 }
 0x13d   :  { %v341_v47 = vadd.f32 %v340_v44, %v282_v46  ;;  %v493_v53 = vpop.f32.mrf.mxu0  ;;  %v1378_v44 = vor.u32 %v1520_v40, %v1375_v41 }
 0x13e   :  { %v501_v6 = vmul.f32 %v499_v5, %v493_v53  ;;  %v1516_v53 = vld [vmem:[#allocation17 + $0x14] sm:$0xf]  ;;  %v448_v5 = vpop.permute.xlu1 %447 }
 0x13f   :  { %v345_v50 = vmax.f32 %v341_v47, 0.0  ;;  %v1518_v47 = vld [vmem:[#allocation17 + $0x24] sm:$0xf]  ;;  %697 = vmatpush.bf16.msrb.mxu1 %v1378_v44 }
 0x140   :  { %v502_v8 = vpack.c.bf16 %v501_v6, %v501_v6 }
 0x144   :  { %v342_v48 = vpop.f32.mrf.mxu1 }
 0x145   :  { %v343_v49 = vadd.f32 %v342_v48, %v282_v46  ;;  %v495_v56 = vpop.f32.mrf.mxu0  ;;  %v1519_v46 = vld [vmem:[#allocation17 + $0x24] sm:$0xf0]  ;;  %v1367_v48 = vld [vmem:[#allocation17 + $0x28] sm:$0xf0] }
 0x147   :  { %v346_v51 = vmax.f32 %v343_v49, 0.0  ;;  %v1366_v49 = vor.u32 %v1519_v46, %v1365_v45 }
 0x149   :  { %v347_v52 = vpack.c.bf16 %v346_v51, %v345_v50  ;;  %v1370_v50 = vor.u32 %v1518_v47, %v1367_v48  ;;  %685 = vmatpush.bf16.msra.mxu0 %v1366_v49  ;;  %v1357_v51 = vld [vmem:[#allocation17 + $0x10] sm:$0xf]  ;;  %v710_v47 = vld [vmem:[%s2259_s12] sm:$0x3] }
 0x14b   :  { %421 = vmatmul.bf16.vlgmr.msra.gmra.mxu2 %v347_v52  ;;  %698 = vmatpush.bf16.msrb.mxu1 %v1370_v50  ;;  %v1517_v52 = vld [vmem:[#allocation17 + $0x14] sm:$0xf0] }
 0x1ce   :  { %v422_v54 = vpop.f32.mrf.mxu2 }
 0x1cf   :  { %v423_v58 = vadd.f32 %v422_v54, %v364_v55  ;;  %v1358_v54 = vor.u32 %v1517_v52, %v1357_v51 }
 0x1d1   :  { %686 = vmatpush.bf16.msra.mxu0 %v1358_v54 }
 0x1d6   :  { %v424_v57 = vpop.f32.mrf.mxu2 }
 0x1d7   :  { %v425_v59 = vadd.f32 %v424_v57, %v364_v55  ;;  %v1359_v55 = vld [vmem:[#allocation17 + $0x18] sm:$0xf0] }
 0x1d8   :  { %v1362_v56 = vor.u32 %v1516_v53, %v1359_v55 }
 0x1d9   :  { %v428_v61 = vpack.c.bf16 %v425_v59, %v423_v58  ;;  %v1349_v58 = vld [vmem:[#allocation17] sm:$0xf]  ;;  %v1515_v59 = vld [vmem:[#allocation17 + $0x4] sm:$0xf0] }
 0x1da   :  { %699 = vmatpush.bf16.msrb.mxu1 %v1362_v56 }
 0x1db   :  { %439 = vmatpush.bf16.msra.mxu3 %v428_v61  ;;  %v1350_v61 = vor.u32 %v1515_v59, %v1349_v58 }
 0x1dd   :  { %687 = vmatpush.bf16.msra.mxu0 %v1350_v61 }
 0x1de   :  { %1313 = vmatmul.msk.bf16.vlgmr.msra.gmra.mxu3 %vm247_vm0, %v427_v62  ;;  %v1351_v62 = vld [vmem:[#allocation17 + $0x8] sm:$0xf0] }
 0x1df   :  { %568 = vmatpush.bf16.msrb.mxu3 %v1513_v60  ;;  %v1514_v60 = vld [vmem:[#allocation17 + $0x4] sm:$0xf] }
 0x1e3   :  { %569 = vmatpush.bf16.msrb.mxu3 %v1512_v63  ;;  %v1354_v63 = vor.u32 %v1514_v60, %v1351_v62 }
 0x1e5   :  { %700 = vmatpush.bf16.msrb.mxu1 %v1354_v63 }
 0x1e7   :  { %570 = vmatpush.bf16.msrb.mxu3 %v1511_v0  ;;  %v1545_v0 = vld [vmem:[#allocation20 + $0x38] sm:$0xff] }
 0x1eb   :  { %571 = vmatpush.bf16.msrb.mxu3 %v1510_v1 }
 0x1ef   :  { %572 = vmatpush.bf16.msrb.mxu3 %v1509_v2  ;;  %v1544_v2 = vld [vmem:[#allocation20 + $0x30] sm:$0xff] }
 0x1f3   :  { %573 = vmatpush.bf16.msrb.mxu3 %v1508_v3  ;;  %v1543_v3 = vld [vmem:[#allocation20 + $0x28] sm:$0xff] }
 0x1f7   :  { %574 = vmatpush.bf16.msrb.mxu3 %v1507_v4  ;;  %v519_v4 = vperm.slane %v2129_v43, 2 }
 0x1fb   :  { %575 = vmatpush.bf16.msrb.mxu3 %v1506_v7 }
 0x1fe   :  { %576 = vmatmul.bf16.vlgmr.msrb.gmra.mxu3 %v502_v8 }
 0x1ff   :  { %1052 = vmatpush.bf16.msra.mxu3 %v1545_v0  ;;  %v1003_v0 = vperm.slane %v2129_v43, 6 }
 0x203   :  { %1053 = vmatpush.bf16.msra.mxu3 %v1544_v2 }
 0x207   :  { %1054 = vmatpush.bf16.msra.mxu3 %v1543_v3 }
 0x20b   :  { %1055 = vmatpush.bf16.msra.mxu3 %v1542_v16  ;;  %v2160_v16 = vld [vmem:[%s2262_s15] sm:$0x3]  ;;  %s1953_s15 = smov 127  }
 0x20f   :  { %1056 = vmatpush.bf16.msra.mxu3 %v1541_v18 }
 0x213   :  { %1057 = vmatpush.bf16.msra.mxu3 %v1540_v20 }
 0x217   :  { %1058 = vmatpush.bf16.msra.mxu3 %v1539_v22 }
 0x21b   :  { %1059 = vmatpush.bf16.msra.mxu3 %v1538_v24 }
 0x261   :  { %v441_v57 = vpop.f32.mrf.mxu3 }
 0x262   :  { %v450_v7 = vmul.f32 %v448_v5, %v441_v57 }
 0x269   :  { %v443_v1 = vpop.f32.mrf.mxu3 }
 0x281   :  { %v577_v6 = vpop.f32.mrf.mxu3 }
 0x282   :  { %v578_v8 = vadd.f32 %v577_v6, %v519_v4 }
 0x284   :  { %v581_v9 = vadd.f32 %v578_v8, %v450_v7  ;;  %v767_v7 = vperm.slane %v2129_v43, 5 }
 0x286   :  { %v582_v11 = vmul.f32 0.5, %v581_v9 }
 0x288   :  { %v583_v12 = vpack.c.bf16 %v582_v11, %v582_v11  ;;  %v850_v11 = vlaneseq }
 0x289   :  { %v579_v13 = vpop.f32.mrf.mxu3 }
 0x28a   :  { %688 = vmatmul.bf16.vlgmr.msra.gmra.mxu0 %v583_v12  ;;  %701 = vmatmul.bf16.vlgmr.msrb.gmra.mxu1 %v583_v12  ;;  %v851_v13 = vand.u32 127, %v850_v11 }
 0x28c   :  { %vm1065_vm4 = vcmp.lt.s32.totalorder %v851_v13, 64  ;;  %v852_v24 = vcvt.s32.f32 %v851_v13 }
 0x28d   :  { %v2166_v22 = vsel %vm1065_vm4, 1.0, %v1952_v21 }
 0x307   :  { %v689_v30 = vpop.f32.mrf.mxu0  ;;  %v702_v31 = vpop.f32.mrf.mxu1 }
 0x308   :  { %v707_v33 = vadd.f32 %v706_v28, %v689_v30  ;;  %v709_v35 = vadd.f32 %v708_v29, %v702_v31 }
 0x30a   :  { %v717_v36 = vmul.f32 %v707_v33, %v707_v33  ;;  %v711_v38 = vmul.f32 0.5, %v709_v35  ;;  %v716_v39 = vadd.f32 1.0, %v709_v35  ;;  %v719_v40 = vmul.f32 1.442695, %v709_v35 }
 0x30c   :  { %v712_v41 = vmul.f32 1.442695, %v711_v38  ;;  %1606 = vpow2.f32 %v719_v40  ;;  %v718_v42 = vsub.f32 %v716_v39, %v717_v36 }
 0x30e   :  { %1608 = vpow2.f32 %v712_v41 }
 0x30f   :  { %v691_v44 = vpop.f32.mrf.mxu0  ;;  %v704_v45 = vpop.f32.mrf.mxu1 }
 0x312   :  { %v1607_v46 = vpop.eup %1606 }
 0x313   :  { %v2144_v48 = vsub.f32 %v718_v42, %v1607_v46 }
 0x314   :  { %v1609_v49 = vpop.eup %1608 }
 0x315   :  { %v714_v50 = vmul.f32 %v1609_v49, %v710_v47 }
 0x317   :  { %v715_v51 = vadd.f32 %v714_v50, %v707_v33 }
 0x319   :  { %v986_v52 = vpack.c.bf16 %v715_v51, %v715_v51  ;;  %v735_v53 = vrot.slane %v715_v51, 6  ;;  %v737_v54 = vrot.slane %v715_v51, 4  ;;  %v739_v55 = vrot.slane %v715_v51, 2 }
 0x31b   :  { %1060 = vmatmul.bf16.vlgmr.msra.gmra.mxu3 %v986_v52  ;;  %v741_v56 = vsel %vm722_vm2, %v715_v51, %v735_v53 }
 0x31c   :  { %v743_v57 = vsel %vm742_vm1, %v741_v56, %v737_v54 }
 0x31d   :  { %v745_v58 = vsel %vm744_vm3, %v743_v57, %v739_v55 }
 0x31e   :  { %v746_v59 = vpack.c.bf16 %v745_v58, %v745_v58 }
 0x320   :  { %v747_v60 = vunpack.c.l.bf16 %v746_v59 }
 0x322   :  { %v748_v61 = vadd.f32 %v1548_v34, %v747_v60  ;;  %v749_v62 = vadd.f32 %v1549_v37, %v747_v60 }
 0x324   :  { %v750_v63 = vpack.c.bf16 %v749_v62, %v748_v61  ;;  %v723_v62 = vsel %vm722_vm2, %v2144_v48, 0.0 }
 0x326   :  { %824 = vmatmul.bf16.vlgmr.msrb.gmra.mxu2 %v750_v63 }
 0x39e   :  { %v1061_v1 = vpop.f32.mrf.mxu3 }
 0x39f   :  { %v2152_v2 = vadd.f32 %v1061_v1, %v1003_v0 }
 0x3a1   :  { %v1070_v3 = vand.u32 2147483647, %v2152_v2  ;;  %v1069_v43 = vmax.f32 %v2152_v2, 0.0  ;;  %v1078_v19 = vmul.f32 %v2160_v16, %v2152_v2  ;;  %vm1100_vm11 = vcmp.gt.f32.partialorder %v2152_v2, 0.0 }
 0x3a2   :  { %v1480_v48 = vsel %vm1100_vm11, 1.0, %v1952_v21 }
 0x3a3   :  { %v1071_v4 = vsub.f32 0.0, %v1070_v3 }
 0x3a5   :  { %v1072_v5 = vmul.f32 1.442695, %v1071_v4 }
 0x3a6   :  { %v1063_v6 = vpop.f32.mrf.mxu3 }
 0x3a7   :  { %1610 = vpow2.f32 %v1072_v5 }
 0x3a9   :  { %v825_v8 = vpop.f32.mrf.mxu2 }
 0x3aa   :  { %v826_v34 = vadd.f32 %v825_v8, %v767_v7 }
 0x3ac   :  { %830 = vmax.xlane.f32.xlu2 %v826_v34 }
 0x3ad   :  { %v1611_v32 = vpop.eup %1610 }
 0x3ae   :  { %v1074_v37 = vadd.f32 1.0, %v1611_v32 }
 0x3b0   :  { %1612 = vlog2.f32 %v1074_v37 }
 0x3b1   :  { %v827_v9 = vpop.f32.mrf.mxu2 }
 0x3b2   :  { %v828_v12 = vadd.f32 %v827_v9, %v767_v7 }
 0x3b4   :  { %832 = vmax.xlane.f32.xlu2 %v828_v12 }
 0x3b6   :  { %v1613_v14 = vpop.eup %1612 }
 0x3b7   :  { %v1076_v17 = vmul.f32 0.6931472, %v1613_v14 }
 0x3b9   :  { %v1077_v18 = vadd.f32 %v1076_v17, %v1069_v43 }
 0x3bb   :  { %v1079_v20 = vsub.f32 %v1077_v18, %v1078_v19 }
 0x3bd   :  { %v2169_v23 = vmul.f32 %v2166_v22, %v1079_v20 }
 0x3cc   :  { %855 = vperm.xlu2 %1604, %v2107_v10  }
 0x3d4   :  { %860 = vperm.xlu2 %1604, %v2111_v15  }
 0x41f   :  { %v831_v25 = vpop.xlane.xlu2 %830 }
 0x420   :  { %vm908_vm5 = vcmp.eq.f32.partialorder %v826_v34, %v831_v25  ;;  %v834_v27 = vsub.f32 %v826_v34, %v831_v25 }
 0x421   :  { %v910_v26 = vsel %vm908_vm5, %v852_v24, 128.0 }
 0x422   :  { %912 = vmin.xlane.f32.xlu2 %v910_v26  ;;  %v836_v28 = vmul.f32 1.442695, %v834_v27 }
 0x424   :  { %1614 = vpow2.f32 %v836_v28  ;;  %v1081_v28 = vsel %vm722_vm2, %v2169_v23, 0.0 }
 0x427   :  { %v833_v29 = vpop.xlane.xlu2 %832 }
 0x428   :  { %v835_v30 = vsub.f32 %v828_v12, %v833_v29  ;;  %vm909_vm6 = vcmp.eq.f32.partialorder %v828_v12, %v833_v29 }
 0x429   :  { %v911_v31 = vsel %vm909_vm6, %v852_v24, 128.0 }
 0x42a   :  { %v838_v33 = vmul.f32 1.442695, %v835_v30  ;;  %914 = vmin.xlane.f32.xlu0 %v911_v31  ;;  %v1615_v35 = vpop.eup %1614  ;;  %v1955_v31 = vmov 2.0  }
 0x42c   :  { %1616 = vpow2.f32 %v838_v33 }
 0x42f   :  { %v856_v39 = vpop.permute.xlu2 %855 }
 0x430   :  { %vm863_vm7 = vcmp.eq.f32.partialorder %v852_v24, %v856_v39 }
 0x431   :  { %v1443_v50 = vsel %vm863_vm7, 1.0, %v1952_v21 }
 0x432   :  { %v1617_v36 = vpop.eup %1616  ;;  %840 = vadd.xlane.f32.xlu0 %v1615_v35 }
 0x433   :  { %842 = vadd.xlane.f32.xlu1 %v1617_v36 }
 0x437   :  { %v861_v45 = vpop.permute.xlu2 %860 }
 0x438   :  { %vm864_vm8 = vcmp.eq.f32.partialorder %v852_v24, %v861_v45 }
 0x439   :  { %v1444_v52 = vsel %vm864_vm8, 1.0, %v1952_v21 }
 0x446   :  { %924 = vrot.lane.b32.xlu0 %v2111_v15, %s1953_s15 }
 0x44c   :  { %922 = vrot.lane.b32.xlu1 %v2107_v10, %s1953_s15 }
 0x495   :  { %v913_v55 = vpop.xlane.xlu2 %912 }
 0x496   :  { %vm916_vm9 = vcmp.eq.f32.partialorder %v913_v55, %v2107_v10 }
 0x497   :  { %v1445_v57 = vsel %vm916_vm9, 1.0, %v1952_v21 }
 0x49d   :  { %v915_v38 = vpop.xlane.xlu0 %914 }
 0x49e   :  { %vm917_vm10 = vcmp.eq.f32.partialorder %v915_v38, %v2111_v15 }
 0x49f   :  { %v1446_v60 = vsel %vm917_vm10, 1.0, %v1952_v21 }
 0x4a5   :  { %v841_v40 = vpop.xlane.xlu0 %840 }
 0x4a6   :  { %1618 = vlog2.f32 %v841_v40  ;;  %v843_v41 = vpop.xlane.xlu1 %842 }
 0x4a7   :  { %1620 = vlog2.f32 %v843_v41 }
 0x4a8   :  { %1622 = vrcp.f32 %v1955_v31 }
 0x4ac   :  { %v1619_v42 = vpop.eup %1618 }
 0x4ad   :  { %v1621_v44 = vpop.eup %1620  ;;  %v845_v46 = vmul.f32 0.6931472, %v1619_v42 }
 0x4ae   :  { %v847_v47 = vmul.f32 0.6931472, %v1621_v44  ;;  %v1623_v35 = vpop.eup %1622 }
 0x4af   :  { %v848_v49 = vsub.f32 %v834_v27, %v845_v46  ;;  %v900_v38 = vmul.f32 2.0, %v1623_v35  ;;  %vm904_vm13 = vweird.f32 %v1623_v35 }
 0x4b0   :  { %v849_v51 = vsub.f32 %v835_v30, %v847_v47  ;;  %v1115_v30 = vsel %vm722_vm2, %v2160_v16, 0.0 }
 0x4b1   :  { %v869_v53 = vmul.f32 %v1443_v50, %v848_v49  ;;  %v901_v40 = vsub.f32 1.0, %v900_v38 }
 0x4b2   :  { %v870_v54 = vmul.f32 %v1444_v52, %v849_v51 }
 0x4b3   :  { %871 = vadd.xlane.f32.xlu1 %v869_v53  ;;  %v902_v45 = vmul.f32 %v1623_v35, %v901_v40 }
 0x4b4   :  { %873 = vadd.xlane.f32.xlu0 %v870_v54 }
 0x4b5   :  { %v903_v50 = vadd.f32 %v1623_v35, %v902_v45 }
 0x4b8   :  { %v925_v59 = vpop.permute.xlu0 %924 }
 0x4b9   :  { %v929_v61 = vmul.f32 %v1446_v60, %v925_v59 }
 0x4be   :  { %v923_v56 = vpop.permute.xlu1 %922 }
 0x4bf   :  { %v928_v58 = vmul.f32 %v1445_v57, %v923_v56  ;;  %v905_v56 = vsel %vm904_vm13, %v1623_v35, %v903_v50 }
 0x4c8   :  { %932 = vrot.lane.b32.xlu0 %v928_v58, %s1953_s15 }
 0x4cc   :  { %934 = vrot.lane.b32.xlu1 %v929_v61, %s1953_s15 }
 0x4d0   :  { %950 = vrot.lane.b32.xlu0 %v2107_v10, %s1954_s29 }
 0x4fa   :  { %724 = vadd.xlane.f32.xlu0 %v723_v62  ;;  %v1956_v62 = vmov 128.0  }
 0x4fb   :  { %1624 = vrcp.f32 %v1956_v62 }
 0x526   :  { %v872_v63 = vpop.xlane.xlu1 %871 }
 0x527   :  { %v875_v0 = vmul.f32 %v872_v63, %v2107_v10  ;;  %v874_v1 = vpop.xlane.xlu0 %873  ;;  %v1103_v10 = vmul.f32 %v1480_v48, %v2166_v22 }
 0x528   :  { %v876_v3 = vmul.f32 %v874_v1, %v2111_v15 }
 0x529   :  { %879 = vrot.lane.b32.xlu2 %v875_v0, %s1954_s29  ;;  %v1104_v34 = vmul.f32 %v1103_v10, %v2160_v16  ;;  %v1143_v29 = vsel %vm722_vm2, %v1103_v10, 0.0 }
 0x52a   :  { %881 = vrot.lane.b32.xlu1 %v876_v3, %s1954_s29 }
 0x52b   :  { %v1105_v32 = vsel %vm722_vm2, %v1104_v34, 0.0 }
 0x532   :  { %952 = vrot.lane.b32.xlu1 %v2111_v15, %s1954_s29  ;;  %s1958_s29 = smov [#allocation21]  }
 0x53a   :  { %v933_v5 = vpop.permute.xlu0 %932 }
 0x53b   :  { %v938_v7 = vsel %vm885_vm12, %v933_v5, 0.0 }
 0x53e   :  { %v935_v4 = vpop.permute.xlu1 %934 }
 0x53f   :  { %v939_v6 = vsel %vm885_vm12, %v935_v4, 0.0  ;;  %v1625_v4 = vpop.eup %1624 }
 0x540   :  { %v940_v8 = vadd.f32 %v939_v6, %v938_v7  ;;  %vm1096_vm0 = vweird.f32 %v1625_v4 }
 0x542   :  { %v951_v15 = vpop.permute.xlu0 %950 }
 0x543   :  { %v956_v24 = vsel %vm885_vm12, %v951_v15, 0.0 }
 0x55c   :  { %941 = vadd.xlane.f32.xlu1 %v940_v8  ;;  %v1092_v8 = vmul.f32 128.0, %v1625_v4 }
 0x55e   :  { %v1093_v15 = vsub.f32 1.0, %v1092_v8 }
 0x564   :  { %1106 = vadd.xlane.f32.xlu1 %v1105_v32 }
 0x56d   :  { %v725_v37 = vpop.xlane.xlu0 %724 }
 0x56e   :  { %v726_v2 = vrot.slane %v725_v37, 4 }
 0x570   :  { %v727_v9 = vadd.f32 %v726_v2, %v725_v37 }
 0x572   :  { %v728_v12 = vrot.slane %v727_v9, 2 }
 0x574   :  { %v729_v13 = vadd.f32 %v728_v12, %v727_v9 }
 0x576   :  { %v730_v14 = vrot.slane %v729_v13, 1 }
 0x578   :  { %v731_v43 = vadd.f32 %v730_v14, %v729_v13  ;;  %v1094_v14 = vmul.f32 %v1625_v4, %v1093_v15 }
 0x57a   :  { %1550 = vpush %v731_v43 }
 0x583   :  { %v880_v17 = vpop.permute.xlu2 %879 }
 0x584   :  { %v886_v19 = vsel %vm885_vm12, %v880_v17, 0.0 }
 0x59c   :  { %v882_v18 = vpop.permute.xlu1 %881 }
 0x59d   :  { %v887_v20 = vsel %vm885_vm12, %v882_v18, 0.0 }
 0x59e   :  { %v888_v22 = vadd.f32 %v887_v20, %v886_v19 }
 0x5a0   :  { %889 = vadd.xlane.f32.xlu2 %v888_v22 }
 0x5a4   :  { %v953_v25 = vpop.permute.xlu1 %952 }
 0x5a5   :  { %v957_v26 = vsel %vm885_vm12, %v953_v25, 0.0  ;;  %v1095_v25 = vadd.f32 %v1625_v4, %v1094_v14 }
 0x5a6   :  { %v958_v27 = vadd.f32 %v957_v26, %v956_v24 }
 0x5a7   :  { %v1097_v35 = vsel %vm1096_vm0, %v1625_v4, %v1095_v25 }
 0x5a8   :  { %959 = vadd.xlane.f32.xlu0 %v958_v27  ;;  %1082 = vadd.xlane.f32.xlu2 %v1081_v28 }
 0x5ab   :  { %s2207_s3 = spop %1550 }
 0x5ac   :  { %s733_s2 = smul.f32 -0.25, %s2207_s3  ;;  %s1223_s3 = sshll.u32 %s1958_s29, 4  ;;  %s1224_s3 = int_to_ptr.vmem [resolvable:$true] %s1223_s3 }
 0x5ae   :  { %s1172_s25 = smul.f32 %s733_s2, %s2268_s23 }
 0x5b0   :  { %1144 = vadd.xlane.f32.xlu2 %v1143_v29  ;;  %1116 = vadd.xlane.f32.xlu0 %v1115_v30 }
 0x5cf   :  { %v942_v33 = vpop.xlane.xlu1 %941 }
 0x5d0   :  { %v943_v36 = vrot.slane %v942_v33, 4 }
 0x5d2   :  { %v944_v39 = vadd.f32 %v943_v36, %v942_v33 }
 0x5d4   :  { %v945_v42 = vrot.slane %v944_v39, 2 }
 0x5d6   :  { %v946_v47 = vadd.f32 %v945_v42, %v944_v39  ;;  %v2219_v39 = vshrl.u32 %v850_v11, 7 }
 0x5d7   :  { %v1107_v0 = vpop.xlane.xlu1 %1106 }
 0x5d8   :  { %v947_v53 = vrot.slane %v946_v47, 1  ;;  %v1108_v5 = vrot.slane %v1107_v0, 4  ;;  %vm1176_vm3 = vcmp.eq.s32.totalorder %v2219_v39, 0  ;;  %vm1181_vm4 = vcmp.eq.s32.totalorder %v2219_v39, 1 }
 0x5d9   :  { %vm1187_vm5 = vcmp.eq.s32.totalorder %v2219_v39, 2  ;;  %vm1193_vm6 = vcmp.eq.s32.totalorder %v2219_v39, 3  ;;  %vm1199_vm7 = vcmp.eq.s32.totalorder %v2219_v39, 4  ;;  %vm1205_vm12 = vcmp.eq.s32.totalorder %v2219_v39, 5 }
 0x5da   :  { %v948_v58 = vadd.f32 %v947_v53, %v946_v47  ;;  %v1109_v10 = vadd.f32 %v1108_v5, %v1107_v0  ;;  %v1483_v11 = vsel %vm1187_vm5, 1.0, %v1952_v21  ;;  %v1484_v50 = vsel %vm1193_vm6, 1.0, %v1952_v21 }
 0x5db   :  { %v1486_v15 = vsel %vm1205_vm12, 1.0, %v1952_v21 }
 0x5dc   :  { %v1110_v2 = vrot.slane %v1109_v10, 2 }
 0x5de   :  { %v1111_v17 = vadd.f32 %v1110_v2, %v1109_v10 }
 0x5e0   :  { %v1112_v28 = vrot.slane %v1111_v17, 1 }
 0x5e2   :  { %v1113_v36 = vadd.f32 %v1112_v28, %v1111_v17 }
 0x613   :  { %v890_v41 = vpop.xlane.xlu2 %889 }
 0x614   :  { %v891_v23 = vrot.slane %v890_v41, 4 }
 0x616   :  { %v892_v44 = vadd.f32 %v891_v23, %v890_v41  ;;  %v1481_v41 = vsel %vm1176_vm3, 1.0, %v1952_v21  ;;  %v1482_v23 = vsel %vm1181_vm4, 1.0, %v1952_v21 }
 0x618   :  { %v893_v46 = vrot.slane %v892_v44, 2 }
 0x61a   :  { %v894_v49 = vadd.f32 %v893_v46, %v892_v44  ;;  %v1190_v44 = vstv %s733_s2 }
 0x61b   :  { %v960_v51 = vpop.xlane.xlu0 %959  ;;  %v1083_v63 = vpop.xlane.xlu2 %1082 }
 0x61c   :  { %v961_v16 = vrot.slane %v960_v51, 4  ;;  %v895_v52 = vrot.slane %v894_v49, 1  ;;  %v1084_v1 = vrot.slane %v1083_v63, 4 }
 0x61e   :  { %v962_v54 = vadd.f32 %v961_v16, %v960_v51  ;;  %v896_v55 = vadd.f32 %v895_v52, %v894_v49  ;;  %v1085_v7 = vadd.f32 %v1084_v1, %v1083_v63  ;;  %v1191_v16 = vmul.f32 %v1483_v11, %v1190_v44 }
 0x620   :  { %v963_v57 = vrot.slane %v962_v54, 2  ;;  %1552 = vpush %v896_v55  ;;  %v1086_v32 = vrot.slane %v1085_v7, 2  ;;  %v1485_v55 = vsel %vm1199_vm7, 1.0, %v1952_v21 }
 0x621   :  { %1554 = vpush %v905_v56 }
 0x622   :  { %1556 = vpush %v948_v58  ;;  %v964_v59 = vadd.f32 %v963_v57, %v962_v54  ;;  %v1087_v13 = vadd.f32 %v1086_v32, %v1085_v7 }
 0x623   :  { %v1117_v3 = vpop.xlane.xlu0 %1116  ;;  %v1145_v40 = vpop.xlane.xlu2 %1144 }
 0x624   :  { %v965_v60 = vrot.slane %v964_v59, 1  ;;  %v1118_v48 = vrot.slane %v1117_v3, 4  ;;  %v1088_v24 = vrot.slane %v1087_v13, 1  ;;  %v1146_v45 = vrot.slane %v1145_v40, 4 }
 0x626   :  { %v966_v61 = vadd.f32 %v965_v60, %v964_v59  ;;  %v1119_v34 = vadd.f32 %v1118_v48, %v1117_v3  ;;  %v1089_v33 = vadd.f32 %v1088_v24, %v1087_v13  ;;  %v1147_v54 = vadd.f32 %v1146_v45, %v1145_v40 }
 0x628   :  { %1558 = vpush %v966_v61  ;;  %v1120_v12 = vrot.slane %v1119_v34, 2  ;;  %v1148_v61 = vrot.slane %v1147_v54, 2 }
 0x62a   :  { %v1121_v19 = vadd.f32 %v1120_v12, %v1119_v34  ;;  %v1149_v1 = vadd.f32 %v1148_v61, %v1147_v54 }
 0x62c   :  { %v1122_v30 = vrot.slane %v1121_v19, 1  ;;  %v1150_v48 = vrot.slane %v1149_v1, 1 }
 0x62e   :  { %v1123_v38 = vadd.f32 %v1122_v30, %v1121_v19  ;;  %v1151_v32 = vadd.f32 %v1150_v48, %v1149_v1 }
 0x651   :  { %s1553_s0 = spop %1552 }
 0x652   :  { %s898_s10 = ssub.f32 0.0, %s1553_s0  ;;  %s1555_s30 = spop %1554 }
 0x653   :  { %s2211_s20 = spop %1556 }
 0x654   :  { %s2209_s1 = smul.f32 %s1555_s30, %s898_s10  ;;  %s1225_s30 = sshll.u32 %s2264_s17, 4  ;;  %s1226_s30 = int_to_ptr.hbm [resolvable:$true] %s1225_s30 }
 0x656   :  { %s1173_s24 = sadd.f32 %s1172_s25, %s2209_s1  ;;  %v1202_v56 = vstv %s2209_s1 }
 0x657   :  { %v1203_v59 = vmul.f32 %v1485_v55, %v1202_v56 }
 0x658   :  { %v1179_v42 = vstv %s1173_s24 }
 0x659   :  { %s1559_s5 = spop %1558  ;;  %v1180_v47 = vmul.f32 %v1481_v41, %v1179_v42 }
 0x65a   :  { %s968_s22 = smax.f32 %s1957_s21, %s1559_s5 }
 0x65b   :  { %v969_v6 = vstv %s968_s22 }
 0x65c   :  { %1626 = vrcp.f32 %v969_v6  ;;  %v981_v18 = vand.u32 2147483648, %v969_v6  ;;  %v979_v22 = vand.u32 2147483647, %v969_v6  ;;  %vm975_vm15 = vweird.f32 %v969_v6 }
 0x65e   :  { %v982_v27 = vor.u32 1.1754944e-38, %v981_v18  ;;  %vm980_vm2 = vcmp.eq.f32.partialorder %v979_v22, 8.507059e+37 }
 0x662   :  { %v1627_v37 = vpop.eup %1626 }
 0x663   :  { %v971_v9 = vmul.f32 %v1627_v37, %v969_v6  ;;  %vm976_vm14 = vweird.f32 %v1627_v37 }
 0x664   :  { %vm977_vm1 = vmor %vm975_vm15, %vm976_vm14 }
 0x665   :  { %v972_v43 = vsub.f32 1.0, %v971_v9 }
 0x667   :  { %v973_v20 = vmul.f32 %v1627_v37, %v972_v43 }
 0x669   :  { %v974_v26 = vadd.f32 %v1627_v37, %v973_v20 }
 0x66b   :  { %v978_v29 = vsel %vm977_vm1, %v1627_v37, %v974_v26  ;;  %vm1211_vm1 = vcmp.eq.s32.totalorder %v2219_v39, 6 }
 0x66c   :  { %v983_v31 = vsel %vm980_vm2, %v982_v27, %v978_v29  ;;  %v1487_v26 = vsel %vm1211_vm1, 1.0, %v1952_v21 }
 0x66d   :  { %1560 = vpush %v983_v31 }
 0x66e   :  { %1562 = vpush %v1089_v33 }
 0x66f   :  { %1564 = vpush %v1097_v35 }
 0x670   :  { %1566 = vpush %v1113_v36 }
 0x671   :  { %1568 = vpush %v1123_v38 }
 0x69e   :  { %s1561_s7 = spop %1560 }
 0x69f   :  { %s985_s27 = smul.f32 %s1561_s7, %s2211_s20  ;;  %s1563_s26 = spop %1562 }
 0x6a0   :  { %s1565_s11 = spop %1564 }
 0x6a1   :  { %v1184_v46 = vstv %s985_s27  ;;  %s1099_s14 = smul.f32 %s1565_s11, %s1563_s26  ;;  %s2230_s9 = spop %1566 }
 0x6a2   :  { %v1185_v49 = vmul.f32 %v1482_v23, %v1184_v46  ;;  %s1569_s18 = spop %1568 }
 0x6a3   :  { %v1196_v51 = vstv %s1099_s14  ;;  %s1125_s19 = smax.f32 %s1957_s21, %s1569_s18 }
 0x6a4   :  { %v1186_v52 = vadd.f32 %v1185_v49, %v1180_v47  ;;  %v1126_v53 = vstv %s1125_s19  ;;  %v1197_v58 = vmul.f32 %v1484_v50, %v1196_v51 }
 0x6a5   :  { %1628 = vrcp.f32 %v1126_v53  ;;  %v1138_v4 = vand.u32 2147483648, %v1126_v53  ;;  %v1136_v6 = vand.u32 2147483647, %v1126_v53  ;;  %vm1132_vm9 = vweird.f32 %v1126_v53 }
 0x6a6   :  { %v1192_v57 = vadd.f32 %v1191_v16, %v1186_v52 }
 0x6a7   :  { %v1139_v8 = vor.u32 1.1754944e-38, %v1138_v4  ;;  %vm1137_vm11 = vcmp.eq.f32.partialorder %v1136_v6, 8.507059e+37 }
 0x6a8   :  { %v1198_v60 = vadd.f32 %v1197_v58, %v1192_v57 }
 0x6aa   :  { %v1204_v62 = vadd.f32 %v1203_v59, %v1198_v60 }
 0x6ab   :  { %v1629_v63 = vpop.eup %1628 }
 0x6ac   :  { %v1128_v0 = vmul.f32 %v1629_v63, %v1126_v53  ;;  %vm1133_vm8 = vweird.f32 %v1629_v63 }
 0x6ad   :  { %vm1134_vm10 = vmor %vm1132_vm9, %vm1133_vm8 }
 0x6ae   :  { %v1129_v3 = vsub.f32 1.0, %v1128_v0 }
 0x6b0   :  { %v1130_v5 = vmul.f32 %v1629_v63, %v1129_v3 }
 0x6b2   :  { %v1131_v7 = vadd.f32 %v1629_v63, %v1130_v5 }
 0x6b4   :  { %v1135_v10 = vsel %vm1134_vm10, %v1629_v63, %v1131_v7 }
 0x6b5   :  { %v1140_v34 = vsel %vm1137_vm11, %v1139_v8, %v1135_v10 }
 0x6b6   :  { %1570 = vpush %v1140_v34 }
 0x6b7   :  { %1572 = vpush %v1151_v32 }
 0x6e7   :  { %s1571_s6 = spop %1570 }
 0x6e8   :  { %s1142_s8 = smul.f32 %s1571_s6, %s2230_s9  ;;  %s1573_s16 = spop %1572 }
 0x6e9   :  { %s1153_s12 = smax.f32 %s1957_s21, %s1573_s16 }
 0x6ea   :  { %v1208_v37 = vstv %s1142_s8  ;;  %v1154_v2 = vstv %s1153_s12 }
 0x6eb   :  { %v1209_v9 = vmul.f32 %v1486_v15, %v1208_v37  ;;  %1630 = vrcp.f32 %v1154_v2  ;;  %v1166_v17 = vand.u32 2147483648, %v1154_v2  ;;  %v1164_v19 = vand.u32 2147483647, %v1154_v2 }
 0x6ec   :  { %vm1160_vm14 = vweird.f32 %v1154_v2 }
 0x6ed   :  { %v1210_v12 = vadd.f32 %v1209_v9, %v1204_v62  ;;  %v1167_v22 = vor.u32 1.1754944e-38, %v1166_v17  ;;  %vm1165_vm0 = vcmp.eq.f32.partialorder %v1164_v19, 8.507059e+37 }
 0x6f1   :  { %v1631_v13 = vpop.eup %1630 }
 0x6f2   :  { %v1156_v14 = vmul.f32 %v1631_v13, %v1154_v2  ;;  %vm1161_vm13 = vweird.f32 %v1631_v13 }
 0x6f3   :  { %vm1162_vm15 = vmor %vm1160_vm14, %vm1161_vm13 }
 0x6f4   :  { %v1157_v43 = vsub.f32 1.0, %v1156_v14 }
 0x6f6   :  { %v1158_v18 = vmul.f32 %v1631_v13, %v1157_v43 }
 0x6f8   :  { %v1159_v20 = vadd.f32 %v1631_v13, %v1158_v18 }
 0x6fa   :  { %v1163_v24 = vsel %vm1162_vm15, %v1631_v13, %v1159_v20 }
 0x6fb   :  { %v1168_v25 = vsel %vm1165_vm0, %v1167_v22, %v1163_v24 }
 0x6fc   :  { %1574 = vpush %v1168_v25 }
 0x72d   :  { %s1575_s28 = spop %1574 }
 0x72e   :  { %s1170_s15 = smul.f32 %s1575_s28, %s2230_s9 }
 0x730   :  { %v1214_v27 = vstv %s1170_s15 }
 0x731   :  { %v1215_v28 = vmul.f32 %v1487_v26, %v1214_v27 }
 0x733   :  { %v1216_v29 = vadd.f32 %v1215_v28, %v1210_v12 }
 0x735   :  { %1217 = vst [vmem:[#allocation21] sm:$0xff] %v1216_v29 }
 0x736   :  { %1228 = dma.vmem_to_hbm [thread:$0]  %s1224_s3, 128, %s1226_s30, [#allocation5]  }
 0x737   :  { %1932 = dma.done.wait [#allocation5], 128  }
 0x738   :  { %1933 = vsyncadd [#allocation5], 4294967168 }
 0x739   :  { %1233 = vsyncpa [#allocation4], 1 }
 0x73a   :  { %1234 = vsyncpa [#allocation7], 1 }
 0x73b   :  { %1235 = vsyncpa [#allocation10], 1 }
 0x73c   :  { %1236 = vsyncpa [#allocation13], 1 }
 0x73d   :  { %1237 = vsyncpa [#allocation16], 1 }
 0x73e   :  { %1238 = vsyncpa [#allocation19], 1 }
 0x73f   :  { %1239 = vsyncpa [#allocation5], 1 }

</bundles_post_ra>
